<compile_context>
chip_gen: v5e
topology: v5e:2x2
jax: 0.10.0
libtpu: 0.0.40
codegen_flags: <defaults>
</compile_context>

<pallas_src>
import functools

import numpy as np
import jax
import jax.numpy as jnp
from jax import lax
from jax.experimental import pallas as pl
from jax.experimental.pallas import tpu as pltpu


# ------------------------------ fused kernel --------------------------------

def _fused_forward_kernel(x_ref,                      # (28, 56)  = (H, W*Cin)
                          t1_ref, b1_ref,             # (5,56,144), (1,144)
                          rs1_ref, cs1_ref,           # (2,12,24), (2,144,72)
                          t2_ref, b2_ref,             # (5,72,128), (1,128)
                          rs2_ref, cs2_ref,           # (2,4,8),   (2,128,64)
                          g1_ref, fb1_ref,            # (4,64,120), (1,120)
                          w2_ref, fb2_ref,            # (120,84),  (1,84)
                          w3_ref, fb3_ref,            # (84,10),   (1,10)
                          out_ref,                    # (1, 10)
                          p1_scr, p2_scr):            # VMEM scratch
    f32 = jnp.float32

    # ---- conv1 (5x5 VALID) + ReLU: banded matmuls over row-shifted slabs ----
    k1 = t1_ref.shape[0]
    h1 = x_ref.shape[0] - (k1 - 1)                    # 24 output rows
    acc = jnp.dot(x_ref[pl.ds(0, h1), :], t1_ref[0], preferred_element_type=f32)
    for di in range(1, k1):
        acc = acc + jnp.dot(x_ref[pl.ds(di, h1), :], t1_ref[di],
                            preferred_element_type=f32)
    y1 = jnp.maximum(acc + b1_ref[...], 0.0)          # (24, 24*F)

    # ---- pool1 (2x2 max): 0/1 selection matmuls + elementwise max -----------
    rm = jnp.maximum(jnp.dot(rs1_ref[0], y1, preferred_element_type=f32),
                     jnp.dot(rs1_ref[1], y1, preferred_element_type=f32))
    p1_scr[...] = jnp.maximum(jnp.dot(rm, cs1_ref[0], preferred_element_type=f32),
                              jnp.dot(rm, cs1_ref[1], preferred_element_type=f32))

    # ---- conv2 (5x5 VALID) + ReLU -------------------------------------------
    k2 = t2_ref.shape[0]
    h2 = p1_scr.shape[0] - (k2 - 1)                   # 8 output rows
    acc2 = jnp.dot(p1_scr[pl.ds(0, h2), :], t2_ref[0], preferred_element_type=f32)
    for di in range(1, k2):
        acc2 = acc2 + jnp.dot(p1_scr[pl.ds(di, h2), :], t2_ref[di],
                              preferred_element_type=f32)
    y2 = jnp.maximum(acc2 + b2_ref[...], 0.0)         # (8, 128)

    # ---- pool2 (2x2 max) -----------------------------------------------------
    rm2 = jnp.maximum(jnp.dot(rs2_ref[0], y2, preferred_element_type=f32),
                      jnp.dot(rs2_ref[1], y2, preferred_element_type=f32))
    p2_scr[...] = jnp.maximum(jnp.dot(rm2, cs2_ref[0], preferred_element_type=f32),
                              jnp.dot(rm2, cs2_ref[1], preferred_element_type=f32))

    # ---- fc1 (+ReLU): NCHW-flatten permutation is baked into g1 -------------
    nrow = g1_ref.shape[0]                            # 4 spatial rows
    h = jnp.dot(p2_scr[pl.ds(0, 1), :], g1_ref[0], preferred_element_type=f32)
    for r in range(1, nrow):
        h = h + jnp.dot(p2_scr[pl.ds(r, 1), :], g1_ref[r],
                        preferred_element_type=f32)
    h = jnp.maximum(h + fb1_ref[...], 0.0)            # (1, 120)

    # ---- fc2 (+ReLU) and fc3 -------------------------------------------------
    h = jnp.maximum(jnp.dot(h, w2_ref[...], preferred_element_type=f32)
                    + fb2_ref[...], 0.0)              # (1, 84)
    out = jnp.dot(h, w3_ref[...], preferred_element_type=f32) + fb3_ref[...]
    out_ref[...] = out.astype(out_ref.dtype)          # (1, output_size)


# --------------------- host-side parameter preparation ----------------------

def prepare_operands(params):
    """Lower PyTorch-style weights into the structured matrices the kernel uses.

    Activation layouts (per example, everything channels-last / lane-dense):
      input : (28, 56)   [h, w*2+c]
      conv1 : (24, 144)  [h, w*6+c]      pool1 : (12, 72)
      conv2 : (8, 128)   [h, w*16+c]     pool2 : (4, 64)
    """
    (cw1, cb1, cw2, cb2, fw1, fb1, fw2, fb2, fw3, fb3) = [np.asarray(p) for p in params]
    K = 5
    C0, F, C2 = 2, cw1.shape[0], 16
    W1o, W1p = 24, 12                                   # conv1 out W, pool1 out W
    W2o, W2p = 8, 4                                     # conv2 out W, pool2 out W

    # conv1 banded weights: T1[di, (j+dj)*C0 + c, j*F + o] = cw1[o, c, di, dj]
    T1 = np.zeros((K, 28 * C0, W1o * F), np.float32)
    for di in range(K):
        for dj in range(K):
            for j in range(W1o):
                T1[di, (j + dj) * C0:(j + dj) * C0 + C0, j * F:(j + 1) * F] = cw1[:, :, di, dj].T
    B1 = np.tile(cb1, W1o)[None, :].astype(np.float32)

    # pool1 row/column 0/1 selectors
    RS1 = np.zeros((2, W1p, W1o), np.float32)
    for pi in range(W1p):
        RS1[0, pi, 2 * pi] = 1.0
        RS1[1, pi, 2 * pi + 1] = 1.0
    CS1 = np.zeros((2, W1o * F, W1p * F), np.float32)
    for pj in range(W1p):
        for o in range(F):
            CS1[0, (2 * pj) * F + o, pj * F + o] = 1.0
            CS1[1, (2 * pj + 1) * F + o, pj * F + o] = 1.0

    # conv2 banded weights: T2[di, (j+dj)*F + c, j*C2 + o] = cw2[o, c, di, dj]
    T2 = np.zeros((K, W1p * F, W2o * C2), np.float32)
    for di in range(K):
        for dj in range(K):
            for j in range(W2o):
                T2[di, (j + dj) * F:(j + dj) * F + F, j * C2:(j + 1) * C2] = cw2[:, :, di, dj].T
    B2 = np.tile(cb2, W2o)[None, :].astype(np.float32)

    # pool2 selectors
    RS2 = np.zeros((2, W2p, W2o), np.float32)
    for pi in range(W2p):
        RS2[0, pi, 2 * pi] = 1.0
        RS2[1, pi, 2 * pi + 1] = 1.0
    CS2 = np.zeros((2, W2o * C2, W2p * C2), np.float32)
    for pj in range(W2p):
        for o in range(C2):
            CS2[0, (2 * pj) * C2 + o, pj * C2 + o] = 1.0
            CS2[1, (2 * pj + 1) * C2 + o, pj * C2 + o] = 1.0

    # fc1 with PyTorch NCHW flatten (idx = c*16 + h*4 + w) folded in:
    # G1[h, w*16 + c, n] = fw1[n, c*16 + h*4 + w]
    G1 = np.zeros((4, 4 * C2, fw1.shape[0]), np.float32)
    for h in range(4):
        for w in range(4):
            for c in range(C2):
                G1[h, w * C2 + c, :] = fw1[:, c * 16 + h * 4 + w]
    FB1 = fb1[None, :].astype(np.float32)
    W2T, FB2 = fw2.T.copy().astype(np.float32), fb2[None, :].astype(np.float32)
    W3T, FB3 = fw3.T.copy().astype(np.float32), fb3[None, :].astype(np.float32)

    ops = (T1, B1, RS1, CS1, T2, B2, RS2, CS2, G1, FB1, W2T, FB2, W3T, FB3)
    return tuple(jnp.asarray(a) for a in ops)


# ------------------------------- forward pass --------------------------------

def relation_classifier_forward(x_nchw, operands):
    (T1, B1, RS1, CS1, T2, B2, RS2, CS2, G1, FB1, W2T, FB2, W3T, FB3) = operands
    weights = (T1, B1, RS1, CS1, T2, B2, RS2, CS2, G1, FB1, W2T, FB2, W3T, FB3)

    Bsz, C0, H0, W0 = x_nchw.shape
    n_out = W3T.shape[1]
    # NCHW -> (B, H, W*C) channels-last lane layout (one cheap reshape, read once).
    x2d = jnp.transpose(x_nchw, (0, 2, 3, 1)).reshape(Bsz, H0, W0 * C0)

    def full_spec(a):
        nd = a.ndim
        return pl.BlockSpec(a.shape, lambda b, nd=nd: (0,) * nd)

    p1_shape = (RS1.shape[1], CS1.shape[2])   # (12, 72)
    p2_shape = (RS2.shape[1], CS2.shape[2])   # (4, 64)

    out = pl.pallas_call(
        _fused_forward_kernel,
        grid=(Bsz,),
        in_specs=[pl.BlockSpec((None, H0, W0 * C0), lambda b: (b, 0, 0))]
                 + [full_spec(a) for a in weights],
        out_specs=pl.BlockSpec((None, 1, n_out), lambda b: (b, 0, 0)),
        out_shape=jax.ShapeDtypeStruct((Bsz, 1, n_out), jnp.float32),
        scratch_shapes=[pltpu.VMEM(p1_shape, jnp.float32),
                        pltpu.VMEM(p2_shape, jnp.float32)],
        compiler_params=pltpu.CompilerParams(
            dimension_semantics=("parallel",)),   # v7x: split batch over 2 TCs
    )(x2d, *weights)
    return out.reshape(Bsz, n_out)


# ------------------------- pure-JAX reference (check) ------------------------

def _reference_forward(x_nchw, params):
    (cw1, cb1, cw2, cb2, fw1, fb1, fw2, fb2, fw3, fb3) = params
    dn = ("NCHW", "OIHW", "NCHW")

    def conv_relu_pool(x, w, b):
        y = lax.conv_general_dilated(x, w, (1, 1), "VALID", dimension_numbers=dn)
        y = jnp.maximum(y + b[None, :, None, None], 0.0)
        return lax.reduce_window(y, -jnp.inf, lax.max, (1, 1, 2, 2), (1, 1, 2, 2), "VALID")

    y = conv_relu_pool(x_nchw, cw1, cb1)
    y = conv_relu_pool(y, cw2, cb2)
    y = y.reshape(y.shape[0], -1)
    y = jnp.maximum(y @ fw1.T + fb1, 0.0)
    y = jnp.maximum(y @ fw2.T + fb2, 0.0)
    return y @ fw3.T + fb3


# ---------------------------------- main ------------------------------------

def _init_params(key, n_feature, output_size):
    ks = jax.random.split(key, 10)
    def w(k, shape, fan_in):
        return (jax.random.normal(k, shape, jnp.float32) / jnp.sqrt(fan_in)).astype(jnp.float32)
    cw1 = w(ks[0], (n_feature, 2, 5, 5), 2 * 25)
    cb1 = w(ks[1], (n_feature,), 2 * 25)
    cw2 = w(ks[2], (16, n_feature, 5, 5), n_feature * 25)
    cb2 = w(ks[3], (16,), n_feature * 25)
    fw1 = w(ks[4], (120, 16 * 4 * 4), 256)
    fb1 = w(ks[5], (120,), 256)
    fw2 = w(ks[6], (84, 120), 120)
    fb2 = w(ks[7], (84,), 120)
    fw3 = w(ks[8], (output_size, 84), 84)
    fb3 = w(ks[9], (output_size,), 84)
    return (cw1, cb1, cw2, cb2, fw1, fb1, fw2, fb2, fw3, fb3)


if __name__ == "__main__":
    n_feature = 6
    output_size = 10
    batch = 2

    key = jax.random.PRNGKey(0)
    k_x, k_p = jax.random.split(key)
    # fc1 expects 16*4*4 features -> input must be (B, 2, 28, 28).
    x = jax.random.normal(k_x, (batch, 2, 28, 28), jnp.float32)
    params = _init_params(k_p, n_feature, output_size)
    operands = prepare_operands(params)    # one-time weight lowering (host side)

    fwd = jax.jit(functools.partial(relation_classifier_forward, operands=operands))
    logits = jax.block_until_ready(fwd(x))

    ref = _reference_forward(x, params)
    assert logits.shape == (batch, output_size)
    assert jnp.allclose(logits, ref, rtol=2e-3, atol=2e-3), "mismatch vs reference"

    print("KERNEL_OK")
</pallas_src>

<mosaic_0001>
module attributes {stable_mosaic.version = 11 : i64} {
  func.func @_fused_forward_kernel(%arg0: i32, %arg1: memref<1x28x56xf32, #tpu.memory_space<vmem>>, %arg2: memref<5x56x144xf32, #tpu.memory_space<vmem>>, %arg3: memref<1x144xf32, #tpu.memory_space<vmem>>, %arg4: memref<2x12x24xf32, #tpu.memory_space<vmem>>, %arg5: memref<2x144x72xf32, #tpu.memory_space<vmem>>, %arg6: memref<5x72x128xf32, #tpu.memory_space<vmem>>, %arg7: memref<1x128xf32, #tpu.memory_space<vmem>>, %arg8: memref<2x4x8xf32, #tpu.memory_space<vmem>>, %arg9: memref<2x128x64xf32, #tpu.memory_space<vmem>>, %arg10: memref<4x64x120xf32, #tpu.memory_space<vmem>>, %arg11: memref<1x120xf32, #tpu.memory_space<vmem>>, %arg12: memref<120x84xf32, #tpu.memory_space<vmem>>, %arg13: memref<1x84xf32, #tpu.memory_space<vmem>>, %arg14: memref<84x10xf32, #tpu.memory_space<vmem>>, %arg15: memref<1x10xf32, #tpu.memory_space<vmem>>, %arg16: memref<1x1x10xf32, #tpu.memory_space<vmem>>, %arg17: memref<12x72xf32, #tpu.memory_space<vmem>>, %arg18: memref<4x64xf32, #tpu.memory_space<vmem>>) attributes {dimension_semantics = [#tpu.dimension_semantics<parallel>], iteration_bounds = array<i64: 2>, scalar_prefetch = 0 : i64, scratch_operands = 2 : i64, tpu.core_type = #tpu.core_type<tc>, window_params = [{transform_indices = @transform_0, window_bounds = array<i64: 1, 28, 56>}, {pipeline_mode = #tpu.pipeline_mode<synchronous>, transform_indices = @transform_1, window_bounds = array<i64: 5, 56, 144>}, {pipeline_mode = #tpu.pipeline_mode<synchronous>, transform_indices = @transform_2, window_bounds = array<i64: 1, 144>}, {pipeline_mode = #tpu.pipeline_mode<synchronous>, transform_indices = @transform_3, window_bounds = array<i64: 2, 12, 24>}, {pipeline_mode = #tpu.pipeline_mode<synchronous>, transform_indices = @transform_4, window_bounds = array<i64: 2, 144, 72>}, {pipeline_mode = #tpu.pipeline_mode<synchronous>, transform_indices = @transform_5, window_bounds = array<i64: 5, 72, 128>}, {pipeline_mode = #tpu.pipeline_mode<synchronous>, transform_indices = @transform_6, window_bounds = array<i64: 1, 128>}, {pipeline_mode = #tpu.pipeline_mode<synchronous>, transform_indices = @transform_7, window_bounds = array<i64: 2, 4, 8>}, {pipeline_mode = #tpu.pipeline_mode<synchronous>, transform_indices = @transform_8, window_bounds = array<i64: 2, 128, 64>}, {pipeline_mode = #tpu.pipeline_mode<synchronous>, transform_indices = @transform_9, window_bounds = array<i64: 4, 64, 120>}, {pipeline_mode = #tpu.pipeline_mode<synchronous>, transform_indices = @transform_10, window_bounds = array<i64: 1, 120>}, {pipeline_mode = #tpu.pipeline_mode<synchronous>, transform_indices = @transform_11, window_bounds = array<i64: 120, 84>}, {pipeline_mode = #tpu.pipeline_mode<synchronous>, transform_indices = @transform_12, window_bounds = array<i64: 1, 84>}, {pipeline_mode = #tpu.pipeline_mode<synchronous>, transform_indices = @transform_13, window_bounds = array<i64: 84, 10>}, {pipeline_mode = #tpu.pipeline_mode<synchronous>, transform_indices = @transform_14, window_bounds = array<i64: 1, 10>}, {transform_indices = @transform_15, window_bounds = array<i64: 1, 1, 10>}]} {
    %c0 = arith.constant 0 : index
    %c0_0 = arith.constant 0 : index
    %c0_1 = arith.constant 0 : index
    %0 = vector.load %arg1[%c0, %c0_0, %c0_1] : memref<1x28x56xf32, #tpu.memory_space<vmem>>, vector<1x24x56xf32>
    %1 = vector.shape_cast %0 : vector<1x24x56xf32> to vector<24x56xf32>
    %c0_2 = arith.constant 0 : index
    %c0_3 = arith.constant 0 : index
    %c0_4 = arith.constant 0 : index
    %2 = vector.load %arg2[%c0_2, %c0_3, %c0_4] : memref<5x56x144xf32, #tpu.memory_space<vmem>>, vector<1x56x144xf32>
    %3 = vector.shape_cast %2 : vector<1x56x144xf32> to vector<56x144xf32>
    %cst = arith.constant dense<0.000000e+00> : vector<24x144xf32>
    %4 = tpu.matmul %1, %3, %cst {dimension_numbers = #tpu.dot_dimension_numbers<[1], [0], [0], [1], [0, 0, 1, 1], [], []>} : vector<24x56xf32>, vector<56x144xf32>, vector<24x144xf32> -> vector<24x144xf32>
    %c0_5 = arith.constant 0 : index
    %c1 = arith.constant 1 : index
    %c0_6 = arith.constant 0 : index
    %5 = vector.load %arg1[%c0_5, %c1, %c0_6] : memref<1x28x56xf32, #tpu.memory_space<vmem>>, vector<1x24x56xf32>
    %6 = vector.shape_cast %5 : vector<1x24x56xf32> to vector<24x56xf32>
    %c1_7 = arith.constant 1 : index
    %c0_8 = arith.constant 0 : index
    %c0_9 = arith.constant 0 : index
    %7 = vector.load %arg2[%c1_7, %c0_8, %c0_9] : memref<5x56x144xf32, #tpu.memory_space<vmem>>, vector<1x56x144xf32>
    %8 = vector.shape_cast %7 : vector<1x56x144xf32> to vector<56x144xf32>
    %cst_10 = arith.constant dense<0.000000e+00> : vector<24x144xf32>
    %9 = tpu.matmul %6, %8, %cst_10 {dimension_numbers = #tpu.dot_dimension_numbers<[1], [0], [0], [1], [0, 0, 1, 1], [], []>} : vector<24x56xf32>, vector<56x144xf32>, vector<24x144xf32> -> vector<24x144xf32>
    %10 = arith.addf %4, %9 : vector<24x144xf32>
    %c0_11 = arith.constant 0 : index
    %c2 = arith.constant 2 : index
    %c0_12 = arith.constant 0 : index
    %11 = vector.load %arg1[%c0_11, %c2, %c0_12] : memref<1x28x56xf32, #tpu.memory_space<vmem>>, vector<1x24x56xf32>
    %12 = vector.shape_cast %11 : vector<1x24x56xf32> to vector<24x56xf32>
    %c2_13 = arith.constant 2 : index
    %c0_14 = arith.constant 0 : index
    %c0_15 = arith.constant 0 : index
    %13 = vector.load %arg2[%c2_13, %c0_14, %c0_15] : memref<5x56x144xf32, #tpu.memory_space<vmem>>, vector<1x56x144xf32>
    %14 = vector.shape_cast %13 : vector<1x56x144xf32> to vector<56x144xf32>
    %cst_16 = arith.constant dense<0.000000e+00> : vector<24x144xf32>
    %15 = tpu.matmul %12, %14, %cst_16 {dimension_numbers = #tpu.dot_dimension_numbers<[1], [0], [0], [1], [0, 0, 1, 1], [], []>} : vector<24x56xf32>, vector<56x144xf32>, vector<24x144xf32> -> vector<24x144xf32>
    %16 = arith.addf %10, %15 : vector<24x144xf32>
    %c0_17 = arith.constant 0 : index
    %c3 = arith.constant 3 : index
    %c0_18 = arith.constant 0 : index
    %17 = vector.load %arg1[%c0_17, %c3, %c0_18] : memref<1x28x56xf32, #tpu.memory_space<vmem>>, vector<1x24x56xf32>
    %18 = vector.shape_cast %17 : vector<1x24x56xf32> to vector<24x56xf32>
    %c3_19 = arith.constant 3 : index
    %c0_20 = arith.constant 0 : index
    %c0_21 = arith.constant 0 : index
    %19 = vector.load %arg2[%c3_19, %c0_20, %c0_21] : memref<5x56x144xf32, #tpu.memory_space<vmem>>, vector<1x56x144xf32>
    %20 = vector.shape_cast %19 : vector<1x56x144xf32> to vector<56x144xf32>
    %cst_22 = arith.constant dense<0.000000e+00> : vector<24x144xf32>
    %21 = tpu.matmul %18, %20, %cst_22 {dimension_numbers = #tpu.dot_dimension_numbers<[1], [0], [0], [1], [0, 0, 1, 1], [], []>} : vector<24x56xf32>, vector<56x144xf32>, vector<24x144xf32> -> vector<24x144xf32>
    %22 = arith.addf %16, %21 : vector<24x144xf32>
    %c0_23 = arith.constant 0 : index
    %c4 = arith.constant 4 : index
    %c0_24 = arith.constant 0 : index
    %23 = vector.load %arg1[%c0_23, %c4, %c0_24] : memref<1x28x56xf32, #tpu.memory_space<vmem>>, vector<1x24x56xf32>
    %24 = vector.shape_cast %23 : vector<1x24x56xf32> to vector<24x56xf32>
    %c4_25 = arith.constant 4 : index
    %c0_26 = arith.constant 0 : index
    %c0_27 = arith.constant 0 : index
    %25 = vector.load %arg2[%c4_25, %c0_26, %c0_27] : memref<5x56x144xf32, #tpu.memory_space<vmem>>, vector<1x56x144xf32>
    %26 = vector.shape_cast %25 : vector<1x56x144xf32> to vector<56x144xf32>
    %cst_28 = arith.constant dense<0.000000e+00> : vector<24x144xf32>
    %27 = tpu.matmul %24, %26, %cst_28 {dimension_numbers = #tpu.dot_dimension_numbers<[1], [0], [0], [1], [0, 0, 1, 1], [], []>} : vector<24x56xf32>, vector<56x144xf32>, vector<24x144xf32> -> vector<24x144xf32>
    %28 = arith.addf %22, %27 : vector<24x144xf32>
    %c0_29 = arith.constant 0 : index
    %c0_30 = arith.constant 0 : index
    %29 = vector.load %arg3[%c0_29, %c0_30] : memref<1x144xf32, #tpu.memory_space<vmem>>, vector<1x144xf32>
    %30 = vector.broadcast %29 : vector<1x144xf32> to vector<24x144xf32>
    %31 = arith.addf %28, %30 : vector<24x144xf32>
    %cst_31 = arith.constant 0.000000e+00 : f32
    %32 = vector.broadcast %cst_31 : f32 to vector<24x144xf32>
    %33 = arith.maximumf %31, %32 : vector<24x144xf32>
    %c0_32 = arith.constant 0 : index
    %c0_33 = arith.constant 0 : index
    %c0_34 = arith.constant 0 : index
    %34 = vector.load %arg4[%c0_32, %c0_33, %c0_34] : memref<2x12x24xf32, #tpu.memory_space<vmem>>, vector<1x12x24xf32>
    %35 = vector.shape_cast %34 : vector<1x12x24xf32> to vector<12x24xf32>
    %cst_35 = arith.constant dense<0.000000e+00> : vector<12x144xf32>
    %36 = tpu.matmul %35, %33, %cst_35 {dimension_numbers = #tpu.dot_dimension_numbers<[1], [0], [0], [1], [0, 0, 1, 1], [], []>} : vector<12x24xf32>, vector<24x144xf32>, vector<12x144xf32> -> vector<12x144xf32>
    %c1_36 = arith.constant 1 : index
    %c0_37 = arith.constant 0 : index
    %c0_38 = arith.constant 0 : index
    %37 = vector.load %arg4[%c1_36, %c0_37, %c0_38] : memref<2x12x24xf32, #tpu.memory_space<vmem>>, vector<1x12x24xf32>
    %38 = vector.shape_cast %37 : vector<1x12x24xf32> to vector<12x24xf32>
    %cst_39 = arith.constant dense<0.000000e+00> : vector<12x144xf32>
    %39 = tpu.matmul %38, %33, %cst_39 {dimension_numbers = #tpu.dot_dimension_numbers<[1], [0], [0], [1], [0, 0, 1, 1], [], []>} : vector<12x24xf32>, vector<24x144xf32>, vector<12x144xf32> -> vector<12x144xf32>
    %40 = arith.maximumf %36, %39 : vector<12x144xf32>
    %c0_40 = arith.constant 0 : index
    %c0_41 = arith.constant 0 : index
    %c0_42 = arith.constant 0 : index
    %41 = vector.load %arg5[%c0_40, %c0_41, %c0_42] : memref<2x144x72xf32, #tpu.memory_space<vmem>>, vector<1x144x72xf32>
    %42 = vector.shape_cast %41 : vector<1x144x72xf32> to vector<144x72xf32>
    %cst_43 = arith.constant dense<0.000000e+00> : vector<12x72xf32>
    %43 = tpu.matmul %40, %42, %cst_43 {dimension_numbers = #tpu.dot_dimension_numbers<[1], [0], [0], [1], [0, 0, 1, 1], [], []>} : vector<12x144xf32>, vector<144x72xf32>, vector<12x72xf32> -> vector<12x72xf32>
    %c1_44 = arith.constant 1 : index
    %c0_45 = arith.constant 0 : index
    %c0_46 = arith.constant 0 : index
    %44 = vector.load %arg5[%c1_44, %c0_45, %c0_46] : memref<2x144x72xf32, #tpu.memory_space<vmem>>, vector<1x144x72xf32>
    %45 = vector.shape_cast %44 : vector<1x144x72xf32> to vector<144x72xf32>
    %cst_47 = arith.constant dense<0.000000e+00> : vector<12x72xf32>
    %46 = tpu.matmul %40, %45, %cst_47 {dimension_numbers = #tpu.dot_dimension_numbers<[1], [0], [0], [1], [0, 0, 1, 1], [], []>} : vector<12x144xf32>, vector<144x72xf32>, vector<12x72xf32> -> vector<12x72xf32>
    %47 = arith.maximumf %43, %46 : vector<12x72xf32>
    %c0_48 = arith.constant 0 : index
    %c0_49 = arith.constant 0 : index
    %48 = vector.load %arg17[%c0_48, %c0_49] : memref<12x72xf32, #tpu.memory_space<vmem>>, vector<12x72xf32>
    tpu.vector_store %arg17[%c0_48, %c0_49], %47 {strides = array<i32>} : memref<12x72xf32, #tpu.memory_space<vmem>>, vector<12x72xf32>,
    %c0_50 = arith.constant 0 : index
    %c0_51 = arith.constant 0 : index
    %49 = vector.load %arg17[%c0_50, %c0_51] : memref<12x72xf32, #tpu.memory_space<vmem>>, vector<8x72xf32>
    %c0_52 = arith.constant 0 : index
    %c0_53 = arith.constant 0 : index
    %c0_54 = arith.constant 0 : index
    %50 = vector.load %arg6[%c0_52, %c0_53, %c0_54] : memref<5x72x128xf32, #tpu.memory_space<vmem>>, vector<1x72x128xf32>
    %51 = vector.shape_cast %50 : vector<1x72x128xf32> to vector<72x128xf32>
    %cst_55 = arith.constant dense<0.000000e+00> : vector<8x128xf32>
    %52 = tpu.matmul %49, %51, %cst_55 {dimension_numbers = #tpu.dot_dimension_numbers<[1], [0], [0], [1], [0, 0, 1, 1], [], []>} : vector<8x72xf32>, vector<72x128xf32>, vector<8x128xf32> -> vector<8x128xf32>
    %c1_56 = arith.constant 1 : index
    %c0_57 = arith.constant 0 : index
    %53 = vector.load %arg17[%c1_56, %c0_57] : memref<12x72xf32, #tpu.memory_space<vmem>>, vector<8x72xf32>
    %c1_58 = arith.constant 1 : index
    %c0_59 = arith.constant 0 : index
    %c0_60 = arith.constant 0 : index
    %54 = vector.load %arg6[%c1_58, %c0_59, %c0_60] : memref<5x72x128xf32, #tpu.memory_space<vmem>>, vector<1x72x128xf32>
    %55 = vector.shape_cast %54 : vector<1x72x128xf32> to vector<72x128xf32>
    %cst_61 = arith.constant dense<0.000000e+00> : vector<8x128xf32>
    %56 = tpu.matmul %53, %55, %cst_61 {dimension_numbers = #tpu.dot_dimension_numbers<[1], [0], [0], [1], [0, 0, 1, 1], [], []>} : vector<8x72xf32>, vector<72x128xf32>, vector<8x128xf32> -> vector<8x128xf32>
    %57 = arith.addf %52, %56 : vector<8x128xf32>
    %c2_62 = arith.constant 2 : index
    %c0_63 = arith.constant 0 : index
    %58 = vector.load %arg17[%c2_62, %c0_63] : memref<12x72xf32, #tpu.memory_space<vmem>>, vector<8x72xf32>
    %c2_64 = arith.constant 2 : index
    %c0_65 = arith.constant 0 : index
    %c0_66 = arith.constant 0 : index
    %59 = vector.load %arg6[%c2_64, %c0_65, %c0_66] : memref<5x72x128xf32, #tpu.memory_space<vmem>>, vector<1x72x128xf32>
    %60 = vector.shape_cast %59 : vector<1x72x128xf32> to vector<72x128xf32>
    %cst_67 = arith.constant dense<0.000000e+00> : vector<8x128xf32>
    %61 = tpu.matmul %58, %60, %cst_67 {dimension_numbers = #tpu.dot_dimension_numbers<[1], [0], [0], [1], [0, 0, 1, 1], [], []>} : vector<8x72xf32>, vector<72x128xf32>, vector<8x128xf32> -> vector<8x128xf32>
    %62 = arith.addf %57, %61 : vector<8x128xf32>
    %c3_68 = arith.constant 3 : index
    %c0_69 = arith.constant 0 : index
    %63 = vector.load %arg17[%c3_68, %c0_69] : memref<12x72xf32, #tpu.memory_space<vmem>>, vector<8x72xf32>
    %c3_70 = arith.constant 3 : index
    %c0_71 = arith.constant 0 : index
    %c0_72 = arith.constant 0 : index
    %64 = vector.load %arg6[%c3_70, %c0_71, %c0_72] : memref<5x72x128xf32, #tpu.memory_space<vmem>>, vector<1x72x128xf32>
    %65 = vector.shape_cast %64 : vector<1x72x128xf32> to vector<72x128xf32>
    %cst_73 = arith.constant dense<0.000000e+00> : vector<8x128xf32>
    %66 = tpu.matmul %63, %65, %cst_73 {dimension_numbers = #tpu.dot_dimension_numbers<[1], [0], [0], [1], [0, 0, 1, 1], [], []>} : vector<8x72xf32>, vector<72x128xf32>, vector<8x128xf32> -> vector<8x128xf32>
    %67 = arith.addf %62, %66 : vector<8x128xf32>
    %c4_74 = arith.constant 4 : index
    %c0_75 = arith.constant 0 : index
    %68 = vector.load %arg17[%c4_74, %c0_75] : memref<12x72xf32, #tpu.memory_space<vmem>>, vector<8x72xf32>
    %c4_76 = arith.constant 4 : index
    %c0_77 = arith.constant 0 : index
    %c0_78 = arith.constant 0 : index
    %69 = vector.load %arg6[%c4_76, %c0_77, %c0_78] : memref<5x72x128xf32, #tpu.memory_space<vmem>>, vector<1x72x128xf32>
    %70 = vector.shape_cast %69 : vector<1x72x128xf32> to vector<72x128xf32>
    %cst_79 = arith.constant dense<0.000000e+00> : vector<8x128xf32>
    %71 = tpu.matmul %68, %70, %cst_79 {dimension_numbers = #tpu.dot_dimension_numbers<[1], [0], [0], [1], [0, 0, 1, 1], [], []>} : vector<8x72xf32>, vector<72x128xf32>, vector<8x128xf32> -> vector<8x128xf32>
    %72 = arith.addf %67, %71 : vector<8x128xf32>
    %c0_80 = arith.constant 0 : index
    %c0_81 = arith.constant 0 : index
    %73 = vector.load %arg7[%c0_80, %c0_81] : memref<1x128xf32, #tpu.memory_space<vmem>>, vector<1x128xf32>
    %74 = vector.broadcast %73 : vector<1x128xf32> to vector<8x128xf32>
    %75 = arith.addf %72, %74 : vector<8x128xf32>
    %cst_82 = arith.constant 0.000000e+00 : f32
    %76 = vector.broadcast %cst_82 : f32 to vector<8x128xf32>
    %77 = arith.maximumf %75, %76 : vector<8x128xf32>
    %c0_83 = arith.constant 0 : index
    %c0_84 = arith.constant 0 : index
    %c0_85 = arith.constant 0 : index
    %78 = vector.load %arg8[%c0_83, %c0_84, %c0_85] : memref<2x4x8xf32, #tpu.memory_space<vmem>>, vector<1x4x8xf32>
    %79 = vector.shape_cast %78 : vector<1x4x8xf32> to vector<4x8xf32>
    %cst_86 = arith.constant dense<0.000000e+00> : vector<4x128xf32>
    %80 = tpu.matmul %79, %77, %cst_86 {dimension_numbers = #tpu.dot_dimension_numbers<[1], [0], [0], [1], [0, 0, 1, 1], [], []>} : vector<4x8xf32>, vector<8x128xf32>, vector<4x128xf32> -> vector<4x128xf32>
    %c1_87 = arith.constant 1 : index
    %c0_88 = arith.constant 0 : index
    %c0_89 = arith.constant 0 : index
    %81 = vector.load %arg8[%c1_87, %c0_88, %c0_89] : memref<2x4x8xf32, #tpu.memory_space<vmem>>, vector<1x4x8xf32>
    %82 = vector.shape_cast %81 : vector<1x4x8xf32> to vector<4x8xf32>
    %cst_90 = arith.constant dense<0.000000e+00> : vector<4x128xf32>
    %83 = tpu.matmul %82, %77, %cst_90 {dimension_numbers = #tpu.dot_dimension_numbers<[1], [0], [0], [1], [0, 0, 1, 1], [], []>} : vector<4x8xf32>, vector<8x128xf32>, vector<4x128xf32> -> vector<4x128xf32>
    %84 = arith.maximumf %80, %83 : vector<4x128xf32>
    %c0_91 = arith.constant 0 : index
    %c0_92 = arith.constant 0 : index
    %c0_93 = arith.constant 0 : index
    %85 = vector.load %arg9[%c0_91, %c0_92, %c0_93] : memref<2x128x64xf32, #tpu.memory_space<vmem>>, vector<1x128x64xf32>
    %86 = vector.shape_cast %85 : vector<1x128x64xf32> to vector<128x64xf32>
    %cst_94 = arith.constant dense<0.000000e+00> : vector<4x64xf32>
    %87 = tpu.matmul %84, %86, %cst_94 {dimension_numbers = #tpu.dot_dimension_numbers<[1], [0], [0], [1], [0, 0, 1, 1], [], []>} : vector<4x128xf32>, vector<128x64xf32>, vector<4x64xf32> -> vector<4x64xf32>
    %c1_95 = arith.constant 1 : index
    %c0_96 = arith.constant 0 : index
    %c0_97 = arith.constant 0 : index
    %88 = vector.load %arg9[%c1_95, %c0_96, %c0_97] : memref<2x128x64xf32, #tpu.memory_space<vmem>>, vector<1x128x64xf32>
    %89 = vector.shape_cast %88 : vector<1x128x64xf32> to vector<128x64xf32>
    %cst_98 = arith.constant dense<0.000000e+00> : vector<4x64xf32>
    %90 = tpu.matmul %84, %89, %cst_98 {dimension_numbers = #tpu.dot_dimension_numbers<[1], [0], [0], [1], [0, 0, 1, 1], [], []>} : vector<4x128xf32>, vector<128x64xf32>, vector<4x64xf32> -> vector<4x64xf32>
    %91 = arith.maximumf %87, %90 : vector<4x64xf32>
    %c0_99 = arith.constant 0 : index
    %c0_100 = arith.constant 0 : index
    %92 = vector.load %arg18[%c0_99, %c0_100] : memref<4x64xf32, #tpu.memory_space<vmem>>, vector<4x64xf32>
    tpu.vector_store %arg18[%c0_99, %c0_100], %91 {strides = array<i32>} : memref<4x64xf32, #tpu.memory_space<vmem>>, vector<4x64xf32>,
    %c0_101 = arith.constant 0 : index
    %c0_102 = arith.constant 0 : index
    %93 = vector.load %arg18[%c0_101, %c0_102] : memref<4x64xf32, #tpu.memory_space<vmem>>, vector<1x64xf32>
    %c0_103 = arith.constant 0 : index
    %c0_104 = arith.constant 0 : index
    %c0_105 = arith.constant 0 : index
    %94 = vector.load %arg10[%c0_103, %c0_104, %c0_105] : memref<4x64x120xf32, #tpu.memory_space<vmem>>, vector<1x64x120xf32>
    %95 = vector.shape_cast %94 : vector<1x64x120xf32> to vector<64x120xf32>
    %cst_106 = arith.constant dense<0.000000e+00> : vector<1x120xf32>
    %96 = tpu.matmul %93, %95, %cst_106 {dimension_numbers = #tpu.dot_dimension_numbers<[1], [0], [0], [1], [0, 0, 1, 1], [], []>} : vector<1x64xf32>, vector<64x120xf32>, vector<1x120xf32> -> vector<1x120xf32>
    %c1_107 = arith.constant 1 : index
    %c0_108 = arith.constant 0 : index
    %97 = vector.load %arg18[%c1_107, %c0_108] : memref<4x64xf32, #tpu.memory_space<vmem>>, vector<1x64xf32>
    %c1_109 = arith.constant 1 : index
    %c0_110 = arith.constant 0 : index
    %c0_111 = arith.constant 0 : index
    %98 = vector.load %arg10[%c1_109, %c0_110, %c0_111] : memref<4x64x120xf32, #tpu.memory_space<vmem>>, vector<1x64x120xf32>
    %99 = vector.shape_cast %98 : vector<1x64x120xf32> to vector<64x120xf32>
    %cst_112 = arith.constant dense<0.000000e+00> : vector<1x120xf32>
    %100 = tpu.matmul %97, %99, %cst_112 {dimension_numbers = #tpu.dot_dimension_numbers<[1], [0], [0], [1], [0, 0, 1, 1], [], []>} : vector<1x64xf32>, vector<64x120xf32>, vector<1x120xf32> -> vector<1x120xf32>
    %101 = arith.addf %96, %100 : vector<1x120xf32>
    %c2_113 = arith.constant 2 : index
    %c0_114 = arith.constant 0 : index
    %102 = vector.load %arg18[%c2_113, %c0_114] : memref<4x64xf32, #tpu.memory_space<vmem>>, vector<1x64xf32>
    %c2_115 = arith.constant 2 : index
    %c0_116 = arith.constant 0 : index
    %c0_117 = arith.constant 0 : index
    %103 = vector.load %arg10[%c2_115, %c0_116, %c0_117] : memref<4x64x120xf32, #tpu.memory_space<vmem>>, vector<1x64x120xf32>
    %104 = vector.shape_cast %103 : vector<1x64x120xf32> to vector<64x120xf32>
    %cst_118 = arith.constant dense<0.000000e+00> : vector<1x120xf32>
    %105 = tpu.matmul %102, %104, %cst_118 {dimension_numbers = #tpu.dot_dimension_numbers<[1], [0], [0], [1], [0, 0, 1, 1], [], []>} : vector<1x64xf32>, vector<64x120xf32>, vector<1x120xf32> -> vector<1x120xf32>
    %106 = arith.addf %101, %105 : vector<1x120xf32>
    %c3_119 = arith.constant 3 : index
    %c0_120 = arith.constant 0 : index
    %107 = vector.load %arg18[%c3_119, %c0_120] : memref<4x64xf32, #tpu.memory_space<vmem>>, vector<1x64xf32>
    %c3_121 = arith.constant 3 : index
    %c0_122 = arith.constant 0 : index
    %c0_123 = arith.constant 0 : index
    %108 = vector.load %arg10[%c3_121, %c0_122, %c0_123] : memref<4x64x120xf32, #tpu.memory_space<vmem>>, vector<1x64x120xf32>
    %109 = vector.shape_cast %108 : vector<1x64x120xf32> to vector<64x120xf32>
    %cst_124 = arith.constant dense<0.000000e+00> : vector<1x120xf32>
    %110 = tpu.matmul %107, %109, %cst_124 {dimension_numbers = #tpu.dot_dimension_numbers<[1], [0], [0], [1], [0, 0, 1, 1], [], []>} : vector<1x64xf32>, vector<64x120xf32>, vector<1x120xf32> -> vector<1x120xf32>
    %111 = arith.addf %106, %110 : vector<1x120xf32>
    %c0_125 = arith.constant 0 : index
    %c0_126 = arith.constant 0 : index
    %112 = vector.load %arg11[%c0_125, %c0_126] : memref<1x120xf32, #tpu.memory_space<vmem>>, vector<1x120xf32>
    %113 = arith.addf %111, %112 : vector<1x120xf32>
    %cst_127 = arith.constant 0.000000e+00 : f32
    %114 = vector.broadcast %cst_127 : f32 to vector<1x120xf32>
    %115 = arith.maximumf %113, %114 : vector<1x120xf32>
    %c0_128 = arith.constant 0 : index
    %c0_129 = arith.constant 0 : index
    %116 = vector.load %arg12[%c0_128, %c0_129] : memref<120x84xf32, #tpu.memory_space<vmem>>, vector<120x84xf32>
    %cst_130 = arith.constant dense<0.000000e+00> : vector<1x84xf32>
    %117 = tpu.matmul %115, %116, %cst_130 {dimension_numbers = #tpu.dot_dimension_numbers<[1], [0], [0], [1], [0, 0, 1, 1], [], []>} : vector<1x120xf32>, vector<120x84xf32>, vector<1x84xf32> -> vector<1x84xf32>
    %c0_131 = arith.constant 0 : index
    %c0_132 = arith.constant 0 : index
    %118 = vector.load %arg13[%c0_131, %c0_132] : memref<1x84xf32, #tpu.memory_space<vmem>>, vector<1x84xf32>
    %119 = arith.addf %117, %118 : vector<1x84xf32>
    %cst_133 = arith.constant 0.000000e+00 : f32
    %120 = vector.broadcast %cst_133 : f32 to vector<1x84xf32>
    %121 = arith.maximumf %119, %120 : vector<1x84xf32>
    %c0_134 = arith.constant 0 : index
    %c0_135 = arith.constant 0 : index
    %122 = vector.load %arg14[%c0_134, %c0_135] : memref<84x10xf32, #tpu.memory_space<vmem>>, vector<84x10xf32>
    %cst_136 = arith.constant dense<0.000000e+00> : vector<1x10xf32>
    %123 = tpu.matmul %121, %122, %cst_136 {dimension_numbers = #tpu.dot_dimension_numbers<[1], [0], [0], [1], [0, 0, 1, 1], [], []>} : vector<1x84xf32>, vector<84x10xf32>, vector<1x10xf32> -> vector<1x10xf32>
    %c0_137 = arith.constant 0 : index
    %c0_138 = arith.constant 0 : index
    %124 = vector.load %arg15[%c0_137, %c0_138] : memref<1x10xf32, #tpu.memory_space<vmem>>, vector<1x10xf32>
    %125 = arith.addf %123, %124 : vector<1x10xf32>
    %c0_139 = arith.constant 0 : index
    %c0_140 = arith.constant 0 : index
    %c0_141 = arith.constant 0 : index
    %126 = vector.load %arg16[%c0_139, %c0_140, %c0_141] : memref<1x1x10xf32, #tpu.memory_space<vmem>>, vector<1x1x10xf32>
    %127 = vector.shape_cast %126 : vector<1x1x10xf32> to vector<1x10xf32>
    %128 = vector.shape_cast %125 : vector<1x10xf32> to vector<1x1x10xf32>
    tpu.vector_store %arg16[%c0_139, %c0_140, %c0_141], %128 {strides = array<i32>} : memref<1x1x10xf32, #tpu.memory_space<vmem>>, vector<1x1x10xf32>,
    return
  }
  func.func @transform_0(%arg0: i32) -> (i32, i32, i32) {
    %c0_i32 = arith.constant 0 : i32
    %c0_i32_0 = arith.constant 0 : i32
    %c0_i32_1 = arith.constant 0 : i32
    return %arg0, %c0_i32, %c0_i32_0 : i32, i32, i32
  }
  func.func @transform_1(%arg0: i32) -> (i32, i32, i32) {
    %c0_i32 = arith.constant 0 : i32
    %c0_i32_0 = arith.constant 0 : i32
    %c0_i32_1 = arith.constant 0 : i32
    %c0_i32_2 = arith.constant 0 : i32
    return %c0_i32, %c0_i32_0, %c0_i32_1 : i32, i32, i32
  }
  func.func @transform_2(%arg0: i32) -> (i32, i32) {
    %c0_i32 = arith.constant 0 : i32
    %c0_i32_0 = arith.constant 0 : i32
    %c0_i32_1 = arith.constant 0 : i32
    return %c0_i32, %c0_i32_0 : i32, i32
  }
  func.func @transform_3(%arg0: i32) -> (i32, i32, i32) {
    %c0_i32 = arith.constant 0 : i32
    %c0_i32_0 = arith.constant 0 : i32
    %c0_i32_1 = arith.constant 0 : i32
    %c0_i32_2 = arith.constant 0 : i32
    return %c0_i32, %c0_i32_0, %c0_i32_1 : i32, i32, i32
  }
  func.func @transform_4(%arg0: i32) -> (i32, i32, i32) {
    %c0_i32 = arith.constant 0 : i32
    %c0_i32_0 = arith.constant 0 : i32
    %c0_i32_1 = arith.constant 0 : i32
    %c0_i32_2 = arith.constant 0 : i32
    return %c0_i32, %c0_i32_0, %c0_i32_1 : i32, i32, i32
  }
  func.func @transform_5(%arg0: i32) -> (i32, i32, i32) {
    %c0_i32 = arith.constant 0 : i32
    %c0_i32_0 = arith.constant 0 : i32
    %c0_i32_1 = arith.constant 0 : i32
    %c0_i32_2 = arith.constant 0 : i32
    return %c0_i32, %c0_i32_0, %c0_i32_1 : i32, i32, i32
  }
  func.func @transform_6(%arg0: i32) -> (i32, i32) {
    %c0_i32 = arith.constant 0 : i32
    %c0_i32_0 = arith.constant 0 : i32
    %c0_i32_1 = arith.constant 0 : i32
    return %c0_i32, %c0_i32_0 : i32, i32
  }
  func.func @transform_7(%arg0: i32) -> (i32, i32, i32) {
    %c0_i32 = arith.constant 0 : i32
    %c0_i32_0 = arith.constant 0 : i32
    %c0_i32_1 = arith.constant 0 : i32
    %c0_i32_2 = arith.constant 0 : i32
    return %c0_i32, %c0_i32_0, %c0_i32_1 : i32, i32, i32
  }
  func.func @transform_8(%arg0: i32) -> (i32, i32, i32) {
    %c0_i32 = arith.constant 0 : i32
    %c0_i32_0 = arith.constant 0 : i32
    %c0_i32_1 = arith.constant 0 : i32
    %c0_i32_2 = arith.constant 0 : i32
    return %c0_i32, %c0_i32_0, %c0_i32_1 : i32, i32, i32
  }
  func.func @transform_9(%arg0: i32) -> (i32, i32, i32) {
    %c0_i32 = arith.constant 0 : i32
    %c0_i32_0 = arith.constant 0 : i32
    %c0_i32_1 = arith.constant 0 : i32
    %c0_i32_2 = arith.constant 0 : i32
    return %c0_i32, %c0_i32_0, %c0_i32_1 : i32, i32, i32
  }
  func.func @transform_10(%arg0: i32) -> (i32, i32) {
    %c0_i32 = arith.constant 0 : i32
    %c0_i32_0 = arith.constant 0 : i32
    %c0_i32_1 = arith.constant 0 : i32
    return %c0_i32, %c0_i32_0 : i32, i32
  }
  func.func @transform_11(%arg0: i32) -> (i32, i32) {
    %c0_i32 = arith.constant 0 : i32
    %c0_i32_0 = arith.constant 0 : i32
    %c0_i32_1 = arith.constant 0 : i32
    return %c0_i32, %c0_i32_0 : i32, i32
  }
  func.func @transform_12(%arg0: i32) -> (i32, i32) {
    %c0_i32 = arith.constant 0 : i32
    %c0_i32_0 = arith.constant 0 : i32
    %c0_i32_1 = arith.constant 0 : i32
    return %c0_i32, %c0_i32_0 : i32, i32
  }
  func.func @transform_13(%arg0: i32) -> (i32, i32) {
    %c0_i32 = arith.constant 0 : i32
    %c0_i32_0 = arith.constant 0 : i32
    %c0_i32_1 = arith.constant 0 : i32
    return %c0_i32, %c0_i32_0 : i32, i32
  }
  func.func @transform_14(%arg0: i32) -> (i32, i32) {
    %c0_i32 = arith.constant 0 : i32
    %c0_i32_0 = arith.constant 0 : i32
    %c0_i32_1 = arith.constant 0 : i32
    return %c0_i32, %c0_i32_0 : i32, i32
  }
  func.func @transform_15(%arg0: i32) -> (i32, i32, i32) {
    %c0_i32 = arith.constant 0 : i32
    %c0_i32_0 = arith.constant 0 : i32
    %c0_i32_1 = arith.constant 0 : i32
    return %arg0, %c0_i32, %c0_i32_0 : i32, i32, i32
  }
}

</mosaic_0001>

<bundles_post_ra>
// kernel: relation_classifier_forward.1
= control target key start
LH: loop header
LB: loop body
LE: loop exit
PB: predicated region body
PF: predicated region fallthrough
CT: control target
= control target key end

     0   :  { %s2901_s0 = inlined_call_operand.vmem [shape: f32[2,28,56], index: 0, kind: input, shape index: {}]   ;;  %s2902_s1 = inlined_call_operand.hbm [shape: f32[5,56,144], index: 1, kind: input, shape index: {}]   ;;  %s2903_s2 = inlined_call_operand.vmem [shape: f32[1,144], index: 2, kind: input, shape index: {}]   ;;  %s2904_s3 = inlined_call_operand.vmem [shape: f32[2,12,24], index: 3, kind: input, shape index: {}]   ;;  %s2905_s4 = inlined_call_operand.hbm [shape: f32[2,144,72], index: 4, kind: input, shape index: {}]   ;;  %s2906_s5 = inlined_call_operand.vmem [shape: f32[5,72,128], index: 5, kind: input, shape index: {}]   ;;  %s2907_s6 = inlined_call_operand.vmem [shape: f32[1,128], index: 6, kind: input, shape index: {}]   ;;  %s2908_s7 = inlined_call_operand.vmem [shape: f32[2,4,8], index: 7, kind: input, shape index: {}]   ;;  %s2909_s8 = inlined_call_operand.hbm [shape: f32[2,128,64], index: 8, kind: input, shape index: {}]   ;;  %s2910_s9 = inlined_call_operand.hbm [shape: f32[4,64,120], index: 9, kind: input, shape index: {}]   ;;  %s2911_s10 = inlined_call_operand.vmem [shape: f32[1,120], index: 10, kind: input, shape index: {}]   ;;  %s2912_s11 = inlined_call_operand.hbm [shape: f32[120,84], index: 11, kind: input, shape index: {}]   ;;  %s2913_s12 = inlined_call_operand.vmem [shape: f32[1,84], index: 12, kind: input, shape index: {}]   ;;  %s2914_s13 = inlined_call_operand.hbm [shape: f32[84,10], index: 13, kind: input, shape index: {}]   ;;  %s2915_s14 = inlined_call_operand.vmem [shape: f32[1,10], index: 14, kind: input, shape index: {}]   ;;  %s2916_s15 = inlined_call_operand.hbm [shape: f32[2,1,10], index: 15, kind: output, shape index: {}]  }
   0x1   :  { %2926 = sst [smem:[#allocation28_spill]] %s2902_s1 }
   0x2   :  { %2927 = sst [smem:[#allocation29_spill]] %s2905_s4 }
   0x3   :  { %2928 = sst [smem:[#allocation30_spill]] %s2910_s9 }
   0x4   :  { %2929 = sst [smem:[#allocation31_spill]] %s2915_s14 }
   0x5   :  { %2930 = sst [smem:[#allocation32_spill]] %s2916_s15 }
   0x6   :  { %20 = vsyncpa [#allocation5], 0 }
   0x7   :  { %21 = vsyncpa [#allocation8], 0 }
   0x8   :  { %22 = vsyncpa [#allocation11], 0 }
   0x9   :  { %23 = vsyncpa [#allocation14], 0 }
   0xa   :  { %24 = vsyncpa [#allocation6], 0 }
   0xb   :  { %26 = vsyncpa [#allocation6 + $0x1], 0  ;;  %s2506_s18 = smov 0   ;;  %s2508_s19 = smov 0  }
   0xc   :  { %s2510_s20 = smov 0   ;;  %s2512_s21 = smov 0  }
   0xd LB: > { %2931 = sst [smem:[#allocation21_spill]] %s2402_s18  ;;  %s2527_s22 = sadd.s32 4294967295, %s2414_s21   ;;  %s2414_s21 = sphi %s2512_s21, %s2951_s21   ;;  %s2410_s20 = sphi %s2510_s20, %s2953_s20   ;;  %s2406_s19 = sphi %s2508_s19, %s2955_s19   ;;  %s2402_s18 = sphi %s2506_s18, %s2954_s18  }
   0xe   : > { %2932 = sst [smem:[#allocation22_spill]] %s2410_s20  ;;  %s1932_s23 = sadd.s32 4294967294, %s2414_s21  }
   0xf   : > { %2933 = sst [smem:[#allocation23_spill]] %s2414_s21  ;;  %s2531_s24 = sadd.s32 1, %s2414_s21  }
  0x10   : > { %2934 = sst [smem:[#allocation24_spill]] %s2531_s24  ;;  %s359_s25 = sadd.s32 1, %s2410_s20 }
  0x11   : > { %s356_s26 = ssub.s32 %s2414_s21, %s2531_s24  ;;  %p369_p0 = scmp.ne.s32.totalorder %s2410_s20, %s2406_s19 }
  0x12   : > { %p357_p1 = scmp.eq.s32.totalorder %s356_s26, 0  ;;  %p370_p2 = scmp.eq.s32.totalorder %s2527_s22, 1 }
  0x13   : > { %p375_p3 = scmp.ne.s32.totalorder %s2406_s19, %s2402_s18  ;;  %p376_p4 = scmp.eq.s32.totalorder %s1932_s23, 1 }
  0x14   : > { %s2542_s27 = scalar_select %p357_p1, %s2410_s20, %s359_s25  }
  0x15   : > { %p2544_p5 = por %p370_p2, %p369_p0  ;;  %p2548_p6 = por %p376_p4, %p375_p3 }
  0x16   : > { %2935 = sst [smem:[#allocation25_spill]] %s2542_s27  ;;  %p1933_p7 = scmp.ge.s32.totalorder %s2414_s21, 1 }
  0x17   : > { %s2936_s28 = scalar_select %p2544_p5, 1, 0 }
  0x18   : > { %s2938_s29 = scalar_select %p2548_p6, 1, 0 }
  0x19   : > { %2937 = sst [smem:[#allocation26_spill]] %s2936_s28  ;;  %p383_p8 = scmp.lt.s32.totalorder %s2414_s21, 3 }
  0x1a   : > { %2939 = sst [smem:[#allocation27_spill]] %s2938_s29  ;;  %p2100_p9 = scmp.eq.s32.totalorder %s2527_s22, 0 }
  0x1b   : > { %p2555_p10 = pnand %p1933_p7, %p383_p8  ;;  %s2941_s4 = sld [smem:[#allocation29_spill]] }
  0x1c   : > { %s2416_s25 = smov [#allocation7]   ;;  %s2943_s9 = sld [smem:[#allocation30_spill]] }
  0x1d   : > { %p2077_p11 = pneg %p2555_p10  ;;  %s416_s26 = sshll.u32 %s2416_s25, 4  ;;  %s417_s26 = int_to_ptr.vmem [resolvable:$true] %s416_s26 }
  0x1e   : > { %s2417_s16 = smov 128   ;;  %s2418_s17 = smov 8  }
  0x1f   : > { %p2566_p12 = pnand %p2100_p9, %p2077_p11  ;;  %s2419_s25 = smov [#allocation10]  }
  0x20   : > { %s2944_s1 = sld [smem:[#allocation28_spill]]  ;;  %s2420_s20 = smov [#allocation4]  }
  0x21   : > { %s414_s23 = sshll.u32 %s2941_s4, 4  ;;  %s453_s4 = sshll.u32 %s2419_s25, 4  ;;  %s415_s23 = int_to_ptr.hbm [resolvable:$true] %s414_s23  ;;  %s454_s4 = int_to_ptr.vmem [resolvable:$true] %s453_s4 }
  0x22   : > { %s451_s29 = sshll.u32 %s2943_s9, 4  ;;  %s396_s24 = sshll.u32 %s2420_s20, 4  ;;  %s452_s29 = int_to_ptr.hbm [resolvable:$true] %s451_s29  ;;  %s397_s24 = int_to_ptr.vmem [resolvable:$true] %s396_s24 }
  0x23   : > { %2083 = dma.hbm_to_vmem [thread:$0]  (!%p2566_p12), %s415_s23, 4608, %s417_s26, [#allocation8], %s2417_s16, %s2417_s16, %s2418_s17  }
  0x24   : > { %2089 = dma.hbm_to_vmem [thread:$0]  (!%p2566_p12), %s452_s29, 4096, %s454_s4, [#allocation11], %s2417_s16, %s2417_s16, %s2418_s17  }
  0x25   : > { %s437_s23 = sshll.u32 %s2909_s8, 4  ;;  %s2421_s26 = smov 256   ;;  %s438_s23 = int_to_ptr.hbm [resolvable:$true] %s437_s23 }
  0x26   : > { %s394_s28 = sshll.u32 %s2944_s1, 4  ;;  %s2422_s25 = smov 16   ;;  %s395_s28 = int_to_ptr.hbm [resolvable:$true] %s394_s28 }
  0x27   : > { %2080 = dma.hbm_to_vmem [thread:$0]  (!%p2566_p12), %s395_s28, 8960, %s397_s24, [#allocation5], %s2421_s26, %s2421_s26, %s2422_s25  }
  0x28   : > { %s2423_s18 = smov [#allocation9]   ;;  %s468_s4 = sshll.u32 %s2912_s11, 4  ;;  %s469_s4 = int_to_ptr.hbm [resolvable:$true] %s468_s4 }
  0x29   : > { %s439_s21 = sshll.u32 %s2423_s18, 4  ;;  %s485_s29 = sshll.u32 %s2914_s13, 4  ;;  %s440_s21 = int_to_ptr.vmem [resolvable:$true] %s439_s21  ;;  %s486_s29 = int_to_ptr.hbm [resolvable:$true] %s485_s29 }
  0x2a   : > { %2086 = dma.hbm_to_vmem [thread:$0]  (!%p2566_p12), %s438_s23, 4096, %s440_s21, [#allocation8], %s2417_s16, %s2417_s16, %s2418_s17  }
  0x2b   : > { %s2424_s28 = smov [#allocation12]   ;;  %s2425_s1 = smov [#allocation13]  }
  0x2c   : > { %s470_s20 = sshll.u32 %s2424_s28, 4  ;;  %s487_s15 = sshll.u32 %s2425_s1, 4  ;;  %s471_s20 = int_to_ptr.vmem [resolvable:$true] %s470_s20  ;;  %s488_s15 = int_to_ptr.vmem [resolvable:$true] %s487_s15 }
  0x2d   : > { %2092 = dma.hbm_to_vmem [thread:$0]  (!%p2566_p12), %s469_s4, 1920, %s471_s20, [#allocation11], %s2417_s16, %s2417_s16, %s2418_s17  }
  0x2e   : > { %2095 = dma.hbm_to_vmem [thread:$0]  (!%p2566_p12), %s486_s29, 1408, %s488_s15, [#allocation14], %s2417_s16, %s2417_s16, %s2418_s17  }
  0x2f   : > { %514 = sbr.rel (%p2555_p10) target bundleno = 1427 (0x593), region = 80 }
  0x34   : > { %2381 = dma.done.wait (%p2100_p9), [#allocation5], 8960  }
  0x35   : > { %2383 = vsyncadd (%p2100_p9), [#allocation5], 4294958336 }
  0x36   : > { %2385 = dma.done.wait (%p2100_p9), [#allocation8], 8704  }
  0x37   : > { %2387 = vsyncadd (%p2100_p9), [#allocation8], 4294958592 }
  0x38   : > { %2389 = dma.done.wait (%p2100_p9), [#allocation11], 6016  }
  0x39   : > { %2391 = vsyncadd (%p2100_p9), [#allocation11], 4294961280 }
  0x3a   : > { %2393 = dma.done.wait (%p2100_p9), [#allocation14], 1408  }
  0x3b   : > { %2395 = vsyncadd (%p2100_p9), [#allocation14], 4294965888  ;;  %p587_p13 = scmp.lt.s32.totalorder %s2527_s22, 1  ;;  %v625_v0 = vld [vmem:[#allocation4 + $0xd0] sm:$0xff]  ;;  %v626_v1 = vld [vmem:[#allocation4 + $0xd8] sm:$0xff]  ;;  %vm627_vm0 = vcmask 457728  }
  0x3c   : > { %v607_v2 = vld [vmem:[#allocation4 + $0x60] sm:$0xff]  ;;  %646 = vmatpush.msra.mxu0 %v625_v0  ;;  %672 = vmatpush.msra.mxu1 %v626_v1  ;;  %v608_v3 = vld [vmem:[#allocation4 + $0x68] sm:$0xff]  ;;  %v605_v6 = vld [vmem:[#allocation4 + $0x50] sm:$0xff]  ;;  %vm1025_vm1 = vcmask 195584   ;;  %vm1155_vm2 = vcmask 130048   ;;  %vm1275_vm3 = vcmask 588800  }
  0x3d   : > { %v623_v4 = vld [vmem:[#allocation4 + $0xc0] sm:$0xff]  ;;  %v624_v5 = vld [vmem:[#allocation4 + $0xc8] sm:$0xff]  ;;  %707 = vmatpush.msra.mxu2 %v607_v2  ;;  %733 = vmatpush.msra.mxu3 %v608_v3  ;;  %v606_v7 = vld [vmem:[#allocation4 + $0x58] sm:$0xff]  ;;  %s2634_s27 = scalar_select %p587_p13, %s2527_s22, 1  ;;  %vm1277_vm4 = vcmask 584704   ;;  %vm1458_vm5 = vcmask 64512  }
  0x3e   : > { %v621_v8 = vld [vmem:[#allocation4 + $0xb0] sm:$0xff]  ;;  %647 = vmatpush.msra.mxu0 %v623_v4  ;;  %673 = vmatpush.msra.mxu1 %v624_v5  ;;  %v622_v9 = vld [vmem:[#allocation4 + $0xb8] sm:$0xff]  ;;  %v603_v10 = vld [vmem:[#allocation4 + $0x40] sm:$0xff]  ;;  %vm1582_vm6 = vcmask 519168   ;;  %vm1603_vm7 = vcmask 523264   ;;  %vm1778_vm8 = vcmask 1043456  }
  0x3f   : > { %v604_v11 = vld [vmem:[#allocation4 + $0x48] sm:$0xff]  ;;  %708 = vmatpush.msra.mxu2 %v605_v6  ;;  %734 = vmatpush.msra.mxu3 %v606_v7  ;;  %v619_v12 = vld [vmem:[#allocation4 + $0xa0] sm:$0xff]  ;;  %v601_v14 = vld [vmem:[#allocation4 + $0x30] sm:$0xff]  ;;  %s2047_s30 = sshll.u32 %s2634_s27, 5  ;;  %vm1737_vm9 = vcmask 982016   ;;  %vm1774_vm10 = vcmask 687104  }
  0x40   : > { %v620_v13 = vld [vmem:[#allocation4 + $0xa8] sm:$0xff]  ;;  %648 = vmatpush.msra.mxu0 %v621_v8  ;;  %674 = vmatpush.msra.mxu1 %v622_v9  ;;  %v602_v15 = vld [vmem:[#allocation4 + $0x38] sm:$0xff]  ;;  %v617_v16 = vld [vmem:[#allocation4 + $0x90] sm:$0xff]  ;;  %s2640_s24 = scalar_lea.vmem %s2901_s0, %s2047_s30  ;;  %s585_s25 = sand.u32 1, %s2406_s19   ;;  %vm1802_vm11 = vcmask 73728  }
  0x41   : > { %709 = vmatpush.msra.mxu2 %v603_v10  ;;  %735 = vmatpush.msra.mxu3 %v604_v11  ;;  %v618_v17 = vld [vmem:[#allocation4 + $0x98] sm:$0xff]  ;;  %v599_v18 = vld [vmem:[#allocation4 + $0x20] sm:$0xff]  ;;  %v600_v19 = vld [vmem:[#allocation4 + $0x28] sm:$0xff]  ;;  %s2945_s4 = sld [smem:[#allocation32_spill]]  ;;  %s586_s1 = scalar_lea.vmem [#allocation15], %s585_s25 }
  0x42   : > { %649 = vmatpush.msra.mxu0 %v619_v12  ;;  %675 = vmatpush.msra.mxu1 %v620_v13  ;;  %v615_v20 = vld [vmem:[#allocation4 + $0x80] sm:$0xff]  ;;  %v616_v21 = vld [vmem:[#allocation4 + $0x88] sm:$0xff]  ;;  %v597_v22 = vld [vmem:[#allocation4 + $0x10] sm:$0xff]  ;;  %s2946_s28 = sld [smem:[#allocation31_spill]]  ;;  %s1815_s15 = sshll.u32 %s586_s1, 4  ;;  %s1816_s15 = int_to_ptr.vmem [resolvable:$true] %s1815_s15 }
  0x43   : > { %710 = vmatpush.msra.mxu2 %v601_v14  ;;  %736 = vmatpush.msra.mxu3 %v602_v15  ;;  %v598_v23 = vld [vmem:[#allocation4 + $0x18] sm:$0xff]  ;;  %v613_v24 = vld [vmem:[#allocation4 + $0x70] sm:$0xff]  ;;  %v595_v26 = vld [vmem:[#allocation4] sm:$0xff]  ;;  %s1805_s30 = scalar_lea.sflag [#allocation6], %s585_s25 }
  0x44   : > { %650 = vmatpush.msra.mxu0 %v617_v16  ;;  %676 = vmatpush.msra.mxu1 %v618_v17  ;;  %v614_v25 = vld [vmem:[#allocation4 + $0x78] sm:$0xff]  ;;  %v596_v27 = vld [vmem:[#allocation4 + $0x8] sm:$0xff]  ;;  %v766_v30 = vld [vmem:[#allocation4 + $0x140] sm:$0xff] }
  0x45   : > { %711 = vmatpush.msra.mxu2 %v599_v18  ;;  %737 = vmatpush.msra.mxu3 %v600_v19  ;;  %v609_v28 = vld [vmem:[%s2640_s24 + $0x1] sm:$0xff]  ;;  %v852_v33 = vld [vmem:[#allocation4 + $0x1b8] sm:$0xff]  ;;  %v849_v36 = vld [vmem:[#allocation4 + $0x1a0] sm:$0xff] }
  0x46   : > { %651 = vmatpush.msra.mxu0 %v615_v20  ;;  %677 = vmatpush.msra.mxu1 %v616_v21  ;;  %v592_v29 = vld [vmem:[%s2640_s24] sm:$0xff]  ;;  %v765_v35 = vld [vmem:[#allocation4 + $0x138] sm:$0xff]  ;;  %v762_v38 = vld [vmem:[#allocation4 + $0x120] sm:$0xff] }
  0x47   : > { %712 = vmatpush.msra.mxu2 %v597_v22  ;;  %738 = vmatpush.msra.mxu3 %v598_v23  ;;  %v767_v31 = vld [vmem:[#allocation4 + $0x148] sm:$0xff]  ;;  %v851_v32 = vld [vmem:[#allocation4 + $0x1b0] sm:$0xff]  ;;  %v848_v41 = vld [vmem:[#allocation4 + $0x198] sm:$0xff]  ;;  %s1813_s9 = scalar_lea.hbm %s2945_s4, %s2527_s22  ;;  %s2356_s23 = scalar_lea.hbm %s2945_s4, 2 }
  0x48   : > { %652 = vmatpush.msra.mxu0 %v613_v24  ;;  %678 = vmatpush.msra.mxu1 %v614_v25  ;;  %v764_v34 = vld [vmem:[#allocation4 + $0x130] sm:$0xff]  ;;  %v850_v37 = vld [vmem:[#allocation4 + $0x1a8] sm:$0xff]  ;;  %v761_v45 = vld [vmem:[#allocation4 + $0x118] sm:$0xff]  ;;  %s1817_s27 = sshll.u32 %s1813_s9, 4  ;;  %s1818_s27 = int_to_ptr.hbm [resolvable:$true] %s1817_s27 }
  0x49   : > { %713 = vmatpush.msra.mxu2 %v595_v26  ;;  %739 = vmatpush.msra.mxu3 %v596_v27  ;;  %v763_v39 = vld [vmem:[#allocation4 + $0x128] sm:$0xff]  ;;  %v847_v40 = vld [vmem:[#allocation4 + $0x190] sm:$0xff]  ;;  %v845_v46 = vld [vmem:[#allocation4 + $0x180] sm:$0xff]  ;;  %s2350_s16 = sshra.s32 %s1818_s27, 4  ;;  %s2351_s16 = int_to_ptr.hbm [resolvable:$true] %s2350_s16 }
  0x4a   : > { %1950 = vmatmul.msk.f32.vlgmr.msra.gmra.mxu0 %vm627_vm0, %v609_v28  ;;  %1953 = vmatmul.msk.f32.vlgmr.msra.gmra.mxu1 %vm627_vm0, %v609_v28  ;;  %v610_v42 = vld [vmem:[%s2640_s24 + $0x9] sm:$0xff]  ;;  %v846_v47 = vld [vmem:[#allocation4 + $0x188] sm:$0xff]  ;;  %v758_v48 = vld [vmem:[#allocation4 + $0x100] sm:$0xff]  ;;  %s2352_s17 = scalar_lea.hbm %s2351_s16, 1  ;;  %p2357_p3 = scmp.lt.s32.totalorder %s2351_s16, %s2945_s4 }
  0x4b   : > { %1956 = vmatmul.msk.f32.vlgmr.msra.gmra.mxu2 %vm627_vm0, %v592_v29  ;;  %1959 = vmatmul.msk.f32.vlgmr.msra.gmra.mxu3 %vm627_vm0, %v592_v29  ;;  %v593_v43 = vld [vmem:[%s2640_s24 + $0x8] sm:$0xff]  ;;  %v759_v49 = vld [vmem:[#allocation4 + $0x108] sm:$0xff]  ;;  %v841_v54 = vld [vmem:[#allocation4 + $0x160] sm:$0xff]  ;;  %p2353_p0 = scmp.ne.s32.totalorder %s2351_s16, %s2352_s17  ;;  %p2358_p4 = scmp.lt.s32.totalorder %s2356_s23, %s2352_s17 }
  0x4c   : > { %786 = vmatpush.msrb.mxu0 %v766_v30  ;;  %812 = vmatpush.msrb.mxu1 %v767_v31  ;;  %v760_v44 = vld [vmem:[#allocation4 + $0x110] sm:$0xff]  ;;  %v844_v51 = vld [vmem:[#allocation4 + $0x178] sm:$0xff]  ;;  %v842_v55 = vld [vmem:[#allocation4 + $0x168] sm:$0xff] }
  0x4d   : > { %871 = vmatpush.msrb.mxu2 %v851_v32  ;;  %897 = vmatpush.msrb.mxu3 %v852_v33  ;;  %v843_v50 = vld [vmem:[#allocation4 + $0x170] sm:$0xff]  ;;  %v757_v53 = vld [vmem:[#allocation4 + $0xf8] sm:$0xff]  ;;  %v754_v58 = vld [vmem:[#allocation4 + $0xe0] sm:$0xff]  ;;  %p2354_p1 = pnand %p2353_p0, %p2544_p5  ;;  %p2359_p7 = por %p2358_p4, %p2357_p3 }
  0x4e   : > { %787 = vmatpush.msrb.mxu0 %v764_v34  ;;  %813 = vmatpush.msrb.mxu1 %v765_v35  ;;  %v756_v52 = vld [vmem:[#allocation4 + $0xf0] sm:$0xff]  ;;  %v611_v56 = vld [vmem:[%s2640_s24 + $0x11] sm:$0xff]  ;;  %v755_v59 = vld [vmem:[#allocation4 + $0xe8] sm:$0xff] }
  0x4f   : > { %872 = vmatpush.msrb.mxu2 %v849_v36  ;;  %898 = vmatpush.msrb.mxu3 %v850_v37  ;;  %v594_v57 = vld [vmem:[%s2640_s24 + $0x10] sm:$0xff]  ;;  %v839_v60 = vld [vmem:[#allocation4 + $0x150] sm:$0xff]  ;;  %v937_v63 = vld [vmem:[#allocation4 + $0x228] sm:$0xff]  ;;  %p2355_p2 = pneg %p2354_p1 }
  0x50   : > { %788 = vmatpush.msrb.mxu0 %v762_v38  ;;  %814 = vmatpush.msrb.mxu1 %v763_v39  ;;  %v840_v61 = vld [vmem:[#allocation4 + $0x158] sm:$0xff]  ;;  %v936_v62 = vld [vmem:[#allocation4 + $0x220] sm:$0xff]  ;;  %v934_v0 = vld [vmem:[#allocation4 + $0x210] sm:$0xff] }
  0x51   : > { %873 = vmatpush.msrb.mxu2 %v847_v40  ;;  %899 = vmatpush.msrb.mxu3 %v848_v41  ;;  %v935_v1 = vld [vmem:[#allocation4 + $0x218] sm:$0xff]  ;;  %v750_v2 = vld [vmem:[%s2640_s24 + $0x2] sm:$0xff]  ;;  %v932_v4 = vld [vmem:[#allocation4 + $0x200] sm:$0xff]  ;;  %p2360_p8 = pnand %p2359_p7, %p2355_p2 }
  0x52   : > { %1951 = vmatmul.msk.f32.gmra.mxu0 %vm627_vm0, %v610_v42  ;;  %1954 = vmatmul.msk.f32.gmra.mxu1 %vm627_vm0, %v610_v42  ;;  %v835_v3 = vld [vmem:[%s2640_s24 + $0x3] sm:$0xff]  ;;  %v931_v7 = vld [vmem:[#allocation4 + $0x1f8] sm:$0xff]  ;;  %v928_v8 = vld [vmem:[#allocation4 + $0x1e0] sm:$0xff] }
  0x53   : > { %1957 = vmatmul.msk.f32.gmra.mxu2 %vm627_vm0, %v593_v43  ;;  %1960 = vmatmul.msk.f32.gmra.mxu3 %vm627_vm0, %v593_v43  ;;  %v933_v5 = vld [vmem:[#allocation4 + $0x208] sm:$0xff]  ;;  %v930_v6 = vld [vmem:[#allocation4 + $0x1f0] sm:$0xff]  ;;  %v927_v13 = vld [vmem:[#allocation4 + $0x1d8] sm:$0xff] }
  0x54   : > { %789 = vmatpush.msrb.mxu0 %v760_v44  ;;  %815 = vmatpush.msrb.mxu1 %v761_v45  ;;  %v929_v9 = vld [vmem:[#allocation4 + $0x1e8] sm:$0xff]  ;;  %v751_v10 = vld [vmem:[%s2640_s24 + $0xa] sm:$0xff]  ;;  %v924_v14 = vld [vmem:[#allocation4 + $0x1c0] sm:$0xff] }
  0x55   : > { %874 = vmatpush.msrb.mxu2 %v845_v46  ;;  %900 = vmatpush.msrb.mxu3 %v846_v47  ;;  %v836_v11 = vld [vmem:[%s2640_s24 + $0xb] sm:$0xff]  ;;  %v925_v15 = vld [vmem:[#allocation4 + $0x1c8] sm:$0xff]  ;;  %v837_v17 = vld [vmem:[%s2640_s24 + $0x13] sm:$0xff] }
  0x56   : > { %790 = vmatpush.msrb.mxu0 %v758_v48  ;;  %816 = vmatpush.msrb.mxu1 %v759_v49  ;;  %v926_v12 = vld [vmem:[#allocation4 + $0x1d0] sm:$0xff]  ;;  %v752_v16 = vld [vmem:[%s2640_s24 + $0x12] sm:$0xff] }
  0x57   : > { %875 = vmatpush.msrb.mxu2 %v843_v50  ;;  %901 = vmatpush.msrb.mxu3 %v844_v51  ;;  %v920_v18 = vld [vmem:[%s2640_s24 + $0x4] sm:$0xff]  ;;  %v921_v19 = vld [vmem:[%s2640_s24 + $0xc] sm:$0xff]  ;;  %v922_v20 = vld [vmem:[%s2640_s24 + $0x14] sm:$0xff] }
  0x58   : > { %791 = vmatpush.msrb.mxu0 %v756_v52  ;;  %817 = vmatpush.msrb.mxu1 %v757_v53 }
  0x59   : > { %876 = vmatpush.msrb.mxu2 %v841_v54  ;;  %902 = vmatpush.msrb.mxu3 %v842_v55 }
  0x5a   : > { %1952 = vmatmul.msk.f32.gmra.mxu0 %vm627_vm0, %v611_v56  ;;  %1955 = vmatmul.msk.f32.gmra.mxu1 %vm627_vm0, %v611_v56 }
  0x5b   : > { %1958 = vmatmul.msk.f32.gmra.mxu2 %vm627_vm0, %v594_v57  ;;  %1961 = vmatmul.msk.f32.gmra.mxu3 %vm627_vm0, %v594_v57 }
  0x5c   : > { %792 = vmatpush.msrb.mxu0 %v754_v58  ;;  %818 = vmatpush.msrb.mxu1 %v755_v59 }
  0x5d   : > { %877 = vmatpush.msrb.mxu2 %v839_v60  ;;  %903 = vmatpush.msrb.mxu3 %v840_v61 }
  0x5e   : > { %956 = vmatpush.msra.mxu0 %v936_v62  ;;  %982 = vmatpush.msra.mxu1 %v937_v63  ;;  %v1005_v63 = vld [vmem:[%s2903_s2] sm:$0x3] }
  0x60   : > { %957 = vmatpush.msra.mxu0 %v934_v0  ;;  %983 = vmatpush.msra.mxu1 %v935_v1 }
  0x62   : > { %1962 = vmatmul.msk.f32.vlgmr.msrb.gmra.mxu0 %vm627_vm0, %v750_v2  ;;  %1965 = vmatmul.msk.f32.vlgmr.msrb.gmra.mxu1 %vm627_vm0, %v750_v2 }
  0x63   : > { %1968 = vmatmul.msk.f32.vlgmr.msrb.gmra.mxu2 %vm627_vm0, %v835_v3  ;;  %1971 = vmatmul.msk.f32.vlgmr.msrb.gmra.mxu3 %vm627_vm0, %v835_v3 }
  0x64   : > { %958 = vmatpush.msra.mxu0 %v932_v4  ;;  %984 = vmatpush.msra.mxu1 %v933_v5 }
  0x66   : > { %959 = vmatpush.msra.mxu0 %v930_v6  ;;  %985 = vmatpush.msra.mxu1 %v931_v7  ;;  %v1007_v6 = vperm.slane %v1005_v63, 0  ;;  %v1008_v7 = vperm.slane %v1005_v63, 1  ;;  %v1210_v63 = vld [vmem:[#allocation7 + $0x98] sm:$0xff] }
  0x68   : > { %960 = vmatpush.msra.mxu0 %v928_v8  ;;  %986 = vmatpush.msra.mxu1 %v929_v9 }
  0x6a   : > { %1963 = vmatmul.msk.f32.gmra.mxu0 %vm627_vm0, %v751_v10  ;;  %1966 = vmatmul.msk.f32.gmra.mxu1 %vm627_vm0, %v751_v10 }
  0x6b   : > { %1969 = vmatmul.msk.f32.gmra.mxu2 %vm627_vm0, %v836_v11  ;;  %1972 = vmatmul.msk.f32.gmra.mxu3 %vm627_vm0, %v836_v11 }
  0x6c   : > { %961 = vmatpush.msra.mxu0 %v926_v12  ;;  %987 = vmatpush.msra.mxu1 %v927_v13 }
  0x6e   : > { %962 = vmatpush.msra.mxu0 %v924_v14  ;;  %988 = vmatpush.msra.mxu1 %v925_v15 }
  0x72   : > { %1964 = vmatmul.msk.f32.gmra.mxu0 %vm627_vm0, %v752_v16  ;;  %1967 = vmatmul.msk.f32.gmra.mxu1 %vm627_vm0, %v752_v16 }
  0x73   : > { %1970 = vmatmul.msk.f32.gmra.mxu2 %vm627_vm0, %v837_v17  ;;  %1973 = vmatmul.msk.f32.gmra.mxu3 %vm627_vm0, %v837_v17 }
  0x7a   : > { %1974 = vmatmul.msk.f32.vlgmr.msra.gmra.mxu0 %vm627_vm0, %v920_v18  ;;  %1977 = vmatmul.msk.f32.vlgmr.msra.gmra.mxu1 %vm627_vm0, %v920_v18 }
  0x82   : > { %1975 = vmatmul.msk.f32.gmra.mxu0 %vm627_vm0, %v921_v19  ;;  %1978 = vmatmul.msk.f32.gmra.mxu1 %vm627_vm0, %v921_v19 }
  0x8a   : > { %1976 = vmatmul.msk.f32.gmra.mxu0 %vm627_vm0, %v922_v20  ;;  %1979 = vmatmul.msk.f32.gmra.mxu1 %vm627_vm0, %v922_v20 }
  0xc7   : > { %v654_v21 = vpop.f32.mrf.mxu0  ;;  %v680_v22 = vpop.f32.mrf.mxu1 }
  0xce   : > { %v715_v25 = vpop.f32.mrf.mxu2  ;;  %v741_v26 = vpop.f32.mrf.mxu3 }
  0xcf   : > { %v657_v23 = vpop.f32.mrf.mxu0  ;;  %v683_v24 = vpop.f32.mrf.mxu1  ;;  %v716_v49 = vadd.f32 %v715_v25, %v654_v21  ;;  %v742_v50 = vadd.f32 %v741_v26, %v680_v22  ;;  %v1023_v26 = vld [vmem:[%s2904_s3] sm:$0xff] }
  0xd6   : > { %v718_v29 = vpop.f32.mrf.mxu2  ;;  %v744_v30 = vpop.f32.mrf.mxu3 }
  0xd7   : > { %v660_v27 = vpop.f32.mrf.mxu0  ;;  %v686_v28 = vpop.f32.mrf.mxu1  ;;  %v719_v47 = vadd.f32 %v718_v29, %v657_v23  ;;  %v745_v48 = vadd.f32 %v744_v30, %v683_v24  ;;  %v1151_v29 = vld [vmem:[#allocation7 + $0x70] sm:$0xff] }
  0xd8   : > { %v1984_v30 = vld [vmem:[%s2904_s3 + $0x10] sm:$0xff] }
  0xde   : > { %v721_v33 = vpop.f32.mrf.mxu2  ;;  %v747_v34 = vpop.f32.mrf.mxu3 }
  0xdf   : > { %v794_v31 = vpop.f32.mrf.mxu0  ;;  %v820_v32 = vpop.f32.mrf.mxu1  ;;  %v722_v51 = vadd.f32 %v721_v33, %v660_v27  ;;  %v748_v52 = vadd.f32 %v747_v34, %v686_v28  ;;  %v1024_v27 = vld [vmem:[%s2904_s3 + $0x8] sm:$0xf]  ;;  %v1152_v28 = vld [vmem:[#allocation7 + $0x78] sm:$0xff]  ;;  %v1150_v34 = vld [vmem:[#allocation7 + $0x68] sm:$0xff] }
  0xe0   : > { %v829_v55 = vadd.f32 %v794_v31, %v716_v49  ;;  %v830_v56 = vadd.f32 %v820_v32, %v742_v50  ;;  %1162 = vmatpush.msrb.mxu0 %v1152_v28  ;;  %v1985_v31 = vld [vmem:[%s2904_s3 + $0x18] sm:$0xf]  ;;  %v1224_v32 = vld [vmem:[#allocation7 + $0x108] sm:$0xff]  ;;  %v1223_v33 = vld [vmem:[#allocation7 + $0x100] sm:$0xff] }
  0xe1   : > { %v1215_v49 = vld [vmem:[#allocation7 + $0xc0] sm:$0xff]  ;;  %v1142_v50 = vld [vmem:[#allocation7 + $0x28] sm:$0xff]  ;;  %v2032_v28 = vld [vmem:[%s2906_s5 + $0x158] sm:$0xff] }
  0xe2   : > { %1163 = vmatpush.msrb.mxu0 %v1151_v29  ;;  %v1286_v29 = vld [vmem:[%s2906_s5 + $0x30] sm:$0xff] }
  0xe4   : > { %1164 = vmatpush.msrb.mxu0 %v1150_v34  ;;  %v2030_v34 = vld [vmem:[%s2906_s5 + $0x148] sm:$0xff] }
  0xe6   : > { %v879_v37 = vpop.f32.mrf.mxu2  ;;  %v905_v38 = vpop.f32.mrf.mxu3 }
  0xe7   : > { %v797_v35 = vpop.f32.mrf.mxu0  ;;  %v823_v36 = vpop.f32.mrf.mxu1  ;;  %v914_v0 = vadd.f32 %v879_v37, %v829_v55  ;;  %v915_v1 = vadd.f32 %v905_v38, %v830_v56  ;;  %v1221_v37 = vld [vmem:[#allocation7 + $0xf0] sm:$0xff]  ;;  %v1148_v38 = vld [vmem:[#allocation7 + $0x58] sm:$0xff] }
  0xe8   : > { %v831_v53 = vadd.f32 %v797_v35, %v719_v47  ;;  %v832_v54 = vadd.f32 %v823_v36, %v745_v48  ;;  %v1222_v35 = vld [vmem:[#allocation7 + $0xf8] sm:$0xff]  ;;  %v1149_v36 = vld [vmem:[#allocation7 + $0x60] sm:$0xff]  ;;  %v1216_v47 = vld [vmem:[#allocation7 + $0xc8] sm:$0xff] }
  0xe9   : > { %1165 = vmatpush.msrb.mxu0 %v1149_v36  ;;  %v1143_v48 = vld [vmem:[#allocation7 + $0x30] sm:$0xff]  ;;  %v1140_v56 = vld [vmem:[#allocation7 + $0x18] sm:$0xff] }
  0xea   : > { %v1213_v55 = vld [vmem:[#allocation7 + $0xb0] sm:$0xff] }
  0xeb   : > { %1166 = vmatpush.msrb.mxu0 %v1148_v38  ;;  %v2009_v36 = vld [vmem:[%s2906_s5 + $0xb0] sm:$0xff]  ;;  %v1283_v38 = vld [vmem:[%s2906_s5 + $0x18] sm:$0xff] }
  0xee   : > { %v882_v43 = vpop.f32.mrf.mxu2  ;;  %v908_v44 = vpop.f32.mrf.mxu3 }
  0xef   : > { %v800_v39 = vpop.f32.mrf.mxu0  ;;  %v826_v40 = vpop.f32.mrf.mxu1  ;;  %v916_v59 = vadd.f32 %v882_v43, %v831_v53  ;;  %v917_v60 = vadd.f32 %v908_v44, %v832_v54  ;;  %v1218_v43 = vld [vmem:[#allocation7 + $0xd8] sm:$0xff]  ;;  %v1145_v44 = vld [vmem:[#allocation7 + $0x40] sm:$0xff] }
  0xf0   : > { %v833_v61 = vadd.f32 %v800_v39, %v722_v51  ;;  %v834_v62 = vadd.f32 %v826_v40, %v748_v52  ;;  %v1220_v39 = vld [vmem:[#allocation7 + $0xe8] sm:$0xff]  ;;  %v1147_v40 = vld [vmem:[#allocation7 + $0x50] sm:$0xff]  ;;  %v1214_v51 = vld [vmem:[#allocation7 + $0xb8] sm:$0xff] }
  0xf1   : > { %1167 = vmatpush.msrb.mxu0 %v1147_v40  ;;  %v1154_v52 = vld [vmem:[#allocation7 + $0x88] sm:$0xff]  ;;  %v1226_v53 = vld [vmem:[#allocation7 + $0x118] sm:$0xff]  ;;  %v1141_v54 = vld [vmem:[#allocation7 + $0x20] sm:$0xff] }
  0xf2   : > { %1199 = vmatpush.msrb.mxu1 %v1154_v52  ;;  %v2028_v40 = vld [vmem:[%s2906_s5 + $0x138] sm:$0xff] }
  0xf6   : > { %v885_v57 = vpop.f32.mrf.mxu2  ;;  %v911_v58 = vpop.f32.mrf.mxu3 }
  0xf7   : > { %v964_v41 = vpop.f32.mrf.mxu0  ;;  %v990_v42 = vpop.f32.mrf.mxu1  ;;  %v918_v2 = vadd.f32 %v885_v57, %v833_v61  ;;  %v919_v3 = vadd.f32 %v911_v58, %v834_v62  ;;  %v1153_v57 = vld [vmem:[#allocation7 + $0x80] sm:$0xff]  ;;  %v1212_v58 = vld [vmem:[#allocation7 + $0xa8] sm:$0xff] }
  0xf8   : > { %v999_v10 = vadd.f32 %v964_v41, %v914_v0  ;;  %v1000_v11 = vadd.f32 %v990_v42, %v915_v1  ;;  %v1219_v41 = vld [vmem:[#allocation7 + $0xe0] sm:$0xff]  ;;  %v1146_v42 = vld [vmem:[#allocation7 + $0x48] sm:$0xff]  ;;  %1200 = vmatpush.msrb.mxu1 %v1153_v57  ;;  %v1209_v1 = vld [vmem:[#allocation7 + $0x90] sm:$0xff] }
  0xf9   : > { %1168 = vmatpush.msrb.mxu0 %v1146_v42  ;;  %v1211_v61 = vld [vmem:[#allocation7 + $0xa0] sm:$0xff]  ;;  %v1138_v62 = vld [vmem:[#allocation7 + $0x8] sm:$0xff] }
  0xfa   : > { %v1011_v18 = vadd.f32 %v1007_v6, %v999_v10  ;;  %v1012_v19 = vadd.f32 %v1008_v7, %v1000_v11  ;;  %v1137_v0 = vld [vmem:[#allocation7] sm:$0xff] }
  0xfb   : > { %1169 = vmatpush.msrb.mxu0 %v1145_v44  ;;  %v2007_v42 = vld [vmem:[%s2906_s5 + $0xa0] sm:$0xff]  ;;  %v1281_v44 = vld [vmem:[%s2906_s5 + $0x8] sm:$0xff] }
  0xfc   : > { %v1017_v24 = vmax.f32 %v1011_v18, 0.0  ;;  %v1018_v25 = vmax.f32 %v1012_v19, 0.0  ;;  %v1998_v18 = vld [vmem:[%s2906_s5 + $0x68] sm:$0xff]  ;;  %v1997_v19 = vld [vmem:[%s2906_s5 + $0x60] sm:$0xff] }
  0xff   : > { %v967_v45 = vpop.f32.mrf.mxu0  ;;  %v993_v46 = vpop.f32.mrf.mxu1 }
 0x100   : > { %v1001_v4 = vadd.f32 %v967_v45, %v916_v59  ;;  %v1002_v5 = vadd.f32 %v993_v46, %v917_v60  ;;  %v1217_v45 = vld [vmem:[#allocation7 + $0xd0] sm:$0xff]  ;;  %v1144_v46 = vld [vmem:[#allocation7 + $0x38] sm:$0xff] }
 0x101   : > { %1170 = vmatpush.msrb.mxu0 %v1144_v46  ;;  %v1225_v59 = vld [vmem:[#allocation7 + $0x110] sm:$0xff]  ;;  %v2026_v46 = vld [vmem:[%s2906_s5 + $0x128] sm:$0xff] }
 0x102   : > { %v1013_v14 = vadd.f32 %v1007_v6, %v1001_v4  ;;  %v1014_v15 = vadd.f32 %v1008_v7, %v1002_v5  ;;  %v1139_v60 = vld [vmem:[#allocation7 + $0x10] sm:$0xff]  ;;  %v2002_v4 = vld [vmem:[%s2906_s5 + $0x88] sm:$0xff] }
 0x103   : > { %1171 = vmatpush.msrb.mxu0 %v1143_v48  ;;  %1310 = vmatpush.msra.mxu1 %v2002_v4  ;;  %v2005_v48 = vld [vmem:[%s2906_s5 + $0x90] sm:$0xff] }
 0x104   : > { %v1019_v22 = vmax.f32 %v1013_v14, 0.0  ;;  %v1020_v23 = vmax.f32 %v1014_v15, 0.0  ;;  %v2001_v15 = vld [vmem:[%s2906_s5 + $0x80] sm:$0xff]  ;;  %v2022_v4 = vld [vmem:[%s2906_s5 + $0x110] sm:$0xff] }
 0x105   : > { %1172 = vmatpush.msrb.mxu0 %v1142_v50  ;;  %1311 = vmatpush.msra.mxu1 %v2001_v15 }
 0x107   : > { %v970_v8 = vpop.f32.mrf.mxu0  ;;  %v996_v9 = vpop.f32.mrf.mxu1  ;;  %1173 = vmatpush.msrb.mxu0 %v1141_v54 }
 0x108   : > { %v1003_v12 = vadd.f32 %v970_v8, %v918_v2  ;;  %v1004_v13 = vadd.f32 %v996_v9, %v919_v3 }
 0x109   : > { %1174 = vmatpush.msrb.mxu0 %v1140_v56 }
 0x10a   : > { %v1015_v16 = vadd.f32 %v1007_v6, %v1003_v12  ;;  %v1016_v17 = vadd.f32 %v1008_v7, %v1004_v13 }
 0x10b   : > { %1175 = vmatpush.msrb.mxu0 %v1139_v60 }
 0x10c   : > { %v1021_v20 = vmax.f32 %v1015_v16, 0.0  ;;  %v1022_v21 = vmax.f32 %v1016_v17, 0.0  ;;  %v2000_v16 = vld [vmem:[%s2906_s5 + $0x78] sm:$0xff]  ;;  %v1999_v17 = vld [vmem:[%s2906_s5 + $0x70] sm:$0xff] }
 0x10d   : > { %1176 = vmatpush.msrb.mxu0 %v1138_v62  ;;  %1312 = vmatpush.msra.mxu1 %v2000_v16 }
 0x10e   : > { %1045 = vmatpush.msra.mxu2 %v1021_v20  ;;  %2048 = vmatpush.msra.mxu3 %v1022_v21 }
 0x10f   : > { %1177 = vmatpush.msrb.mxu0 %v1137_v0  ;;  %1313 = vmatpush.msra.mxu1 %v1999_v17  ;;  %v2023_v0 = vld [vmem:[%s2906_s5 + $0x118] sm:$0xff] }
 0x110   : > { %1046 = vmatpush.msra.mxu2 %v1019_v22  ;;  %2049 = vmatpush.msra.mxu3 %v1020_v23 }
 0x111   : > { %1314 = vmatpush.msra.mxu1 %v1998_v18 }
 0x112   : > { %1047 = vmatpush.msra.mxu2 %v1017_v24  ;;  %2050 = vmatpush.msra.mxu3 %v1018_v25 }
 0x113   : > { %1980 = vmatmul.msk.f32.vlgmr.msra.gmra.mxu2 %vm1025_vm1, %v1023_v26  ;;  %1983 = vmatmul.msk.f32.vlgmr.msra.gmra.mxu3 %vm1025_vm1, %v1024_v27 }
 0x114   : > { %1123 = vmatpush.msrb.mxu3 %v1022_v21  ;;  %1068 = vmatpush.msrb.mxu2 %v1022_v21  ;;  %v1995_v21 = vld [vmem:[%s2906_s5 + $0x50] sm:$0xff] }
 0x115   : > { %1315 = vmatpush.msra.mxu1 %v1997_v19 }
 0x116   : > { %1124 = vmatpush.msrb.mxu3 %v1020_v23  ;;  %1069 = vmatpush.msrb.mxu2 %v1020_v23  ;;  %v1288_v23 = vld [vmem:[%s2906_s5 + $0x40] sm:$0xff] }
 0x118   : > { %1125 = vmatpush.msrb.mxu3 %v1018_v25  ;;  %1070 = vmatpush.msrb.mxu2 %v1018_v25  ;;  %v2033_v25 = vld [vmem:[%s2906_s5 + $0x160] sm:$0xff] }
 0x11a   : > { %1100 = vmatpush.msra.mxu2 %v1021_v20  ;;  %1264 = vmatpush.msra.mxu3 %v1226_v53  ;;  %v1996_v20 = vld [vmem:[%s2906_s5 + $0x58] sm:$0xff] }
 0x11b   : > { %1981 = vmatmul.msk.f32.gmra.mxu2 %vm1025_vm1, %v1024_v27  ;;  %1988 = vmatmul.msk.f32.vlgmr.msrb.gmra.mxu3 %vm1025_vm1, %v1984_v30  ;;  %v2012_v27 = vld [vmem:[%s2906_s5 + $0xc8] sm:$0xff] }
 0x11c   : > { %1101 = vmatpush.msra.mxu2 %v1019_v22  ;;  %1265 = vmatpush.msra.mxu3 %v1225_v59  ;;  %v1994_v22 = vld [vmem:[%s2906_s5 + $0x48] sm:$0xff] }
 0x11d   : > { %1316 = vmatpush.msra.mxu1 %v1996_v20 }
 0x11e   : > { %1102 = vmatpush.msra.mxu2 %v1017_v24  ;;  %v2013_v24 = vld [vmem:[%s2906_s5 + $0xd0] sm:$0xff] }
 0x11f   : > { %1317 = vmatpush.msra.mxu1 %v1995_v21  ;;  %1367 = vmatpush.msrb.mxu3 %v2013_v24  ;;  %v2155_v21 = vld [vmem:[%s2907_s6] ss:$0 sm:$0xff] }
 0x121   : > { %1318 = vmatpush.msra.mxu1 %v1994_v22  ;;  %1368 = vmatpush.msrb.mxu3 %v2012_v27  ;;  %v1457_v27 = vld [vmem:[%s2908_s7] sm:$0xf] }
 0x123   : > { %1982 = vmatmul.msk.f32.vlgmr.msrb.gmra.mxu2 %vm1025_vm1, %v1023_v26  ;;  %1989 = vmatmul.msk.f32.gmra.mxu3 %vm1025_vm1, %v1985_v31  ;;  %v1287_v26 = vld [vmem:[%s2906_s5 + $0x38] sm:$0xff] }
 0x124   : > { %1227 = vmatpush.msrb.mxu2 %v1224_v32  ;;  %v1285_v32 = vld [vmem:[%s2906_s5 + $0x28] sm:$0xff] }
 0x126   : > { %1228 = vmatpush.msrb.mxu2 %v1223_v33  ;;  %v2010_v33 = vld [vmem:[%s2906_s5 + $0xb8] sm:$0xff] }
 0x128   : > { %1229 = vmatpush.msrb.mxu2 %v1222_v35  ;;  %v1284_v35 = vld [vmem:[%s2906_s5 + $0x20] sm:$0xff] }
 0x12a   : > { %1230 = vmatpush.msrb.mxu2 %v1221_v37  ;;  %v2029_v37 = vld [vmem:[%s2906_s5 + $0x140] sm:$0xff] }
 0x12b   : > { %1986 = vmatmul.msk.f32.vlgmr.msra.gmra.mxu2 %vm1025_vm1, %v1984_v30  ;;  %v2011_v30 = vld [vmem:[%s2906_s5 + $0xc0] sm:$0xff] }
 0x12c   : > { %1231 = vmatpush.msrb.mxu2 %v1220_v39  ;;  %1369 = vmatpush.msrb.mxu3 %v2011_v30  ;;  %v2008_v39 = vld [vmem:[%s2906_s5 + $0xa8] sm:$0xff]  ;;  %v1559_v30 = vld [vmem:[#allocation9 + $0xf0] sm:$0xff] }
 0x12e   : > { %1232 = vmatpush.msrb.mxu2 %v1219_v41  ;;  %1370 = vmatpush.msrb.mxu3 %v2010_v33  ;;  %v1282_v41 = vld [vmem:[%s2906_s5 + $0x10] sm:$0xff] }
 0x12f   : > { %v1521_v33 = vld [vmem:[#allocation9 + $0x68] sm:$0xff] }
 0x130   : > { %1233 = vmatpush.msrb.mxu2 %v1218_v43  ;;  %1371 = vmatpush.msrb.mxu3 %v2009_v36  ;;  %v2027_v43 = vld [vmem:[%s2906_s5 + $0x130] sm:$0xff]  ;;  %v1556_v36 = vld [vmem:[#allocation9 + $0xd8] sm:$0xff] }
 0x132   : > { %1234 = vmatpush.msrb.mxu2 %v1217_v45  ;;  %1372 = vmatpush.msrb.mxu3 %v2008_v39  ;;  %v2006_v45 = vld [vmem:[%s2906_s5 + $0x98] sm:$0xff] }
 0x133   : > { %1987 = vmatmul.msk.f32.gmra.mxu2 %vm1025_vm1, %v1985_v31  ;;  %v2031_v31 = vld [vmem:[%s2906_s5 + $0x150] sm:$0xff] }
 0x134   : > { %1235 = vmatpush.msrb.mxu2 %v1216_v47  ;;  %1373 = vmatpush.msrb.mxu3 %v2007_v42  ;;  %v1280_v47 = vld [vmem:[%s2906_s5] sm:$0xff]  ;;  %v1518_v39 = vld [vmem:[#allocation9 + $0x50] sm:$0xff] }
 0x135   : > { %v1553_v42 = vld [vmem:[#allocation9 + $0xc0] sm:$0xff] }
 0x136   : > { %1236 = vmatpush.msrb.mxu2 %v1215_v49  ;;  %1374 = vmatpush.msrb.mxu3 %v2006_v45  ;;  %v2025_v49 = vld [vmem:[%s2906_s5 + $0x120] sm:$0xff] }
 0x137   : > { %v1515_v45 = vld [vmem:[#allocation9 + $0x38] sm:$0xff] }
 0x138   : > { %1237 = vmatpush.msrb.mxu2 %v1214_v51  ;;  %1375 = vmatpush.msrb.mxu3 %v2005_v48  ;;  %v1550_v48 = vld [vmem:[#allocation9 + $0xa8] sm:$0xff] }
 0x13a   : > { %1238 = vmatpush.msrb.mxu2 %v1213_v55 }
 0x13c   : > { %1239 = vmatpush.msrb.mxu2 %v1212_v58 }
 0x13e   : > { %1240 = vmatpush.msrb.mxu2 %v1211_v61 }
 0x140   : > { %1241 = vmatpush.msrb.mxu2 %v1210_v63 }
 0x142   : > { %1242 = vmatpush.msrb.mxu2 %v1209_v1 }
 0x144   : > { %1437 = vmatpush.msra.mxu2 %v2033_v25 }
 0x146   : > { %1438 = vmatpush.msra.mxu2 %v2032_v28  ;;  %v1560_v28 = vld [vmem:[#allocation9 + $0xf8] sm:$0xff] }
 0x148   : > { %1439 = vmatpush.msra.mxu2 %v2031_v31  ;;  %v1522_v31 = vld [vmem:[#allocation9 + $0x70] sm:$0xff] }
 0x14a   : > { %1440 = vmatpush.msra.mxu2 %v2030_v34  ;;  %v1557_v34 = vld [vmem:[#allocation9 + $0xe0] sm:$0xff] }
 0x14c   : > { %1441 = vmatpush.msra.mxu2 %v2029_v37  ;;  %v1519_v37 = vld [vmem:[#allocation9 + $0x58] sm:$0xff] }
 0x14e   : > { %1442 = vmatpush.msra.mxu2 %v2028_v40  ;;  %v1554_v40 = vld [vmem:[#allocation9 + $0xc8] sm:$0xff] }
 0x150   : > { %1443 = vmatpush.msra.mxu2 %v2027_v43  ;;  %v1516_v43 = vld [vmem:[#allocation9 + $0x40] sm:$0xff] }
 0x152   : > { %1444 = vmatpush.msra.mxu2 %v2026_v46  ;;  %v1551_v46 = vld [vmem:[#allocation9 + $0xb0] sm:$0xff] }
 0x154   : > { %1445 = vmatpush.msra.mxu2 %v2025_v49  ;;  %v1513_v49 = vld [vmem:[#allocation9 + $0x28] sm:$0xff] }
 0x196   : > { %v1049_v2 = vpop.f32.mrf.mxu2  ;;  %v1075_v3 = vpop.f32.mrf.mxu3 }
 0x19e   : > { %v1052_v5 = vpop.f32.mrf.mxu2  ;;  %v1127_v6 = vpop.f32.mrf.mxu3 }
 0x1a6   : > { %v1072_v7 = vpop.f32.mrf.mxu2  ;;  %v1130_v9 = vpop.f32.mrf.mxu3 }
 0x1a7   : > { %v1134_v8 = vmax.f32 %v1072_v7, %v1127_v6  ;;  %v1136_v12 = vmax.f32 %v1075_v3, %v1130_v9  ;;  %v2020_v6 = vld [vmem:[%s2906_s5 + $0x100] sm:$0xff]  ;;  %v2019_v7 = vld [vmem:[%s2906_s5 + $0xf8] sm:$0xff]  ;;  %v2018_v9 = vld [vmem:[%s2906_s5 + $0xf0] sm:$0xff] }
 0x1a9   : > { %1990 = vmatmul.msk.f32.vlgmr.msrb.gmra.mxu1 %vm1155_vm2, %v1134_v8  ;;  %1992 = vmatmul.msk.f32.vlgmr.msra.gmra.mxu3 %vm1155_vm2, %v1134_v8 }
 0x1aa   : > { %1333 = vmatpush.msrb.mxu1 %v1288_v23 }
 0x1ac   : > { %1334 = vmatpush.msrb.mxu1 %v1287_v26  ;;  %v2036_v26 = vld [vmem:[%s2908_s7 + $0x4] sm:$0xf] }
 0x1ae   : > { %v1104_v10 = vpop.f32.mrf.mxu2  ;;  %1335 = vmatpush.msrb.mxu1 %v1286_v29  ;;  %v1523_v29 = vld [vmem:[#allocation9 + $0x78] sm:$0xff] }
 0x1af   : > { %v1133_v11 = vmax.f32 %v1049_v2, %v1104_v10  ;;  %v2017_v10 = vld [vmem:[%s2906_s5 + $0xe8] sm:$0xff] }
 0x1b0   : > { %1336 = vmatpush.msrb.mxu1 %v1285_v32  ;;  %v1558_v32 = vld [vmem:[#allocation9 + $0xe8] sm:$0xff] }
 0x1b1   : > { %1178 = vmatmul.f32.vlgmr.msrb.gmra.mxu0 %v1133_v11  ;;  %1243 = vmatmul.f32.vlgmr.msrb.gmra.mxu2 %v1133_v11  ;;  %v2016_v11 = vld [vmem:[%s2906_s5 + $0xe0] sm:$0xff] }
 0x1b2   : > { %1991 = vmatmul.msk.f32.gmra.mxu1 %vm1155_vm2, %v1136_v12  ;;  %1993 = vmatmul.msk.f32.gmra.mxu3 %vm1155_vm2, %v1136_v12  ;;  %v2015_v12 = vld [vmem:[%s2906_s5 + $0xd8] sm:$0xff] }
 0x1b3   : > { %1337 = vmatpush.msrb.mxu1 %v1284_v35  ;;  %v1520_v35 = vld [vmem:[#allocation9 + $0x60] sm:$0xff] }
 0x1b5   : > { %1338 = vmatpush.msrb.mxu1 %v1283_v38  ;;  %v1555_v38 = vld [vmem:[#allocation9 + $0xd0] sm:$0xff] }
 0x1b6   : > { %v1107_v13 = vpop.f32.mrf.mxu2 }
 0x1b7   : > { %v1135_v14 = vmax.f32 %v1052_v5, %v1107_v13  ;;  %1339 = vmatpush.msrb.mxu1 %v1282_v41  ;;  %v2021_v5 = vld [vmem:[%s2906_s5 + $0x108] sm:$0xff] }
 0x1b8   : > { %v1517_v41 = vld [vmem:[#allocation9 + $0x48] sm:$0xff] }
 0x1b9   : > { %1181 = vmatmul.f32.gmra.mxu0 %v1135_v14  ;;  %1246 = vmatmul.f32.gmra.mxu2 %v1135_v14 }
 0x1ba   : > { %1340 = vmatpush.msrb.mxu1 %v1281_v44  ;;  %v1552_v44 = vld [vmem:[#allocation9 + $0xb8] sm:$0xff] }
 0x1bc   : > { %1341 = vmatpush.msrb.mxu1 %v1280_v47  ;;  %v1514_v47 = vld [vmem:[#allocation9 + $0x30] sm:$0xff] }
 0x226   : > { %v1202_v51 = vpop.f32.mrf.mxu1 }
 0x22c   : > { %v1267_v52 = vpop.f32.mrf.mxu3 }
 0x22e   : > { %v1179_v50 = vpop.f32.mrf.mxu0 }
 0x22f   : > { %v1203_v54 = vadd.f32 %v1202_v51, %v1179_v50  ;;  %v1205_v58 = vpop.f32.mrf.mxu1  ;;  %v1549_v50 = vld [vmem:[#allocation9 + $0xa0] sm:$0xff]  ;;  %v1548_v51 = vld [vmem:[#allocation9 + $0x98] sm:$0xff] }
 0x234   : > { %v1244_v53 = vpop.f32.mrf.mxu2 }
 0x235   : > { %v1268_v55 = vadd.f32 %v1267_v52, %v1244_v53  ;;  %v1270_v59 = vpop.f32.mrf.mxu3  ;;  %v1547_v52 = vld [vmem:[#allocation9 + $0x90] sm:$0xff]  ;;  %v1512_v53 = vld [vmem:[#allocation9 + $0x20] sm:$0xff] }
 0x236   : > { %v1182_v57 = vpop.f32.mrf.mxu0 }
 0x237   : > { %v1273_v56 = vmax.f32 %v1203_v54, %v1268_v55  ;;  %v1206_v61 = vadd.f32 %v1205_v58, %v1182_v57  ;;  %v1511_v54 = vld [vmem:[#allocation9 + $0x18] sm:$0xff]  ;;  %v1510_v55 = vld [vmem:[#allocation9 + $0x10] sm:$0xff]  ;;  %v1509_v57 = vld [vmem:[#allocation9 + $0x8] sm:$0xff] }
 0x238   : > { %v1545_v58 = vld [vmem:[#allocation9 + $0x80] sm:$0xff] }
 0x239   : > { %1276 = vst.msk [vmem:[#allocation2] sm:$0xff] %vm1275_vm3, %v1273_v56  ;;  %v1546_v56 = vld [vmem:[#allocation9 + $0x88] sm:$0xff] }
 0x23c   : > { %v1247_v60 = vpop.f32.mrf.mxu2 }
 0x23d   : > { %v1271_v62 = vadd.f32 %v1270_v59, %v1247_v60  ;;  %v1508_v59 = vld [vmem:[#allocation9] sm:$0xff]  ;;  %v1592_v60 = vld [vmem:[#allocation10 + $0x38] sm:$0xff] }
 0x23e   : > { %1638 = vmatpush.msrb.mxu2 %v1592_v60 }
 0x23f   : > { %v1274_v63 = vmax.f32 %v1206_v61, %v1271_v62  ;;  %v1591_v61 = vld [vmem:[#allocation10 + $0x30] sm:$0xff]  ;;  %v1602_v62 = vld [vmem:[#allocation10 + $0x78] sm:$0xff] }
 0x240   : > { %v1279_v8 = vld [vmem:[#allocation2] sm:$0xff]  ;;  %1639 = vmatpush.msrb.mxu2 %v1591_v61  ;;  %v1765_v61 = vld [vmem:[#allocation13 + $0x18] sm:$0xff] }
 0x241   : > { %1278 = vst.msk [vmem:[#allocation2 + $0x8] sm:$0xf] %vm1277_vm4, %v1274_v63  ;;  %v1601_v63 = vld [vmem:[#allocation10 + $0x70] sm:$0xff] }
 0x248   : > { %v1289_v1 = vld [vmem:[#allocation2 + $0x1] sm:$0xff] }
 0x249   : > { %v1346_v2 = vld [vmem:[#allocation2 + $0x2] sm:$0xff]  ;;  %2003 = vmatmul.msk.f32.vlgmr.msra.gmra.mxu1 %vm1275_vm3, %v1289_v1  ;;  %v1600_v1 = vld [vmem:[#allocation10 + $0x68] sm:$0xff] }
 0x24a   : > { %v1416_v3 = vld [vmem:[#allocation2 + $0x4] sm:$0xff]  ;;  %2014 = vmatmul.msk.f32.vlgmr.msrb.gmra.mxu3 %vm1275_vm3, %v1346_v2  ;;  %1402 = vmatpush.msra.mxu1 %v2023_v0  ;;  %v1590_v0 = vld [vmem:[#allocation10 + $0x28] sm:$0xff] }
 0x24b   : > { %2034 = vmatmul.msk.f32.vlgmr.msra.gmra.mxu2 %vm1275_vm3, %v1416_v3  ;;  %v1381_v13 = vld [vmem:[#allocation2 + $0x3] sm:$0xff] }
 0x24c   : > { %1403 = vmatpush.msra.mxu1 %v2022_v4  ;;  %v1589_v2 = vld [vmem:[#allocation10 + $0x20] sm:$0xff]  ;;  %1640 = vmatpush.msrb.mxu2 %v1590_v0  ;;  %v1588_v4 = vld [vmem:[#allocation10 + $0x18] sm:$0xff] }
 0x24d   : > { %v1599_v3 = vld [vmem:[#allocation10 + $0x60] sm:$0xff] }
 0x24e   : > { %1404 = vmatpush.msra.mxu1 %v2021_v5  ;;  %1641 = vmatpush.msrb.mxu2 %v1589_v2  ;;  %v1587_v5 = vld [vmem:[#allocation10 + $0x10] sm:$0xff] }
 0x250   : > { %1405 = vmatpush.msra.mxu1 %v2020_v6  ;;  %1642 = vmatpush.msrb.mxu2 %v1588_v4 }
 0x251   : > { %2004 = vmatmul.msk.f32.vlgmr.msrb.gmra.mxu1 %vm1275_vm3, %v1279_v8 }
 0x252   : > { %1406 = vmatpush.msra.mxu1 %v2019_v7  ;;  %1643 = vmatpush.msrb.mxu2 %v1587_v5 }
 0x254   : > { %1407 = vmatpush.msra.mxu1 %v2018_v9  ;;  %v1598_v9 = vld [vmem:[#allocation10 + $0x58] sm:$0xff] }
 0x256   : > { %1408 = vmatpush.msra.mxu1 %v2017_v10  ;;  %v1597_v10 = vld [vmem:[#allocation10 + $0x50] sm:$0xff] }
 0x258   : > { %1409 = vmatpush.msra.mxu1 %v2016_v11  ;;  %v1586_v11 = vld [vmem:[#allocation10 + $0x8] sm:$0xff] }
 0x259   : > { %1644 = vmatpush.msrb.mxu2 %v1586_v11 }
 0x25a   : > { %1410 = vmatpush.msra.mxu1 %v2015_v12  ;;  %v1596_v12 = vld [vmem:[#allocation10 + $0x48] sm:$0xff] }
 0x25b   : > { %2024 = vmatmul.msk.f32.vlgmr.msra.gmra.mxu1 %vm1275_vm3, %v1381_v13  ;;  %v1585_v13 = vld [vmem:[#allocation10] sm:$0xff] }
 0x25c   : > { %1615 = vmatpush.msrb.mxu1 %v1602_v62  ;;  %1645 = vmatpush.msrb.mxu2 %v1585_v13 }
 0x25e   : > { %1616 = vmatpush.msrb.mxu1 %v1601_v63 }
 0x260   : > { %1617 = vmatpush.msrb.mxu1 %v1600_v1 }
 0x262   : > { %1618 = vmatpush.msrb.mxu1 %v1599_v3  ;;  %v1718_v3 = vld [vmem:[%s2911_s10] sm:$0x1] }
 0x264   : > { %1619 = vmatpush.msrb.mxu1 %v1598_v9  ;;  %v1762_v9 = vld [vmem:[#allocation13] sm:$0xff] }
 0x266   : > { %1620 = vmatpush.msrb.mxu1 %v1597_v10  ;;  %v1736_v10 = vld [vmem:[%s2913_s12] sm:$0x1] }
 0x268   : > { %1621 = vmatpush.msrb.mxu1 %v1596_v12 }
 0x2c6   : > { %v1320_v14 = vpop.f32.mrf.mxu1 }
 0x2cd   : > { %v1377_v17 = vpop.f32.mrf.mxu3 }
 0x2ce   : > { %v1343_v15 = vpop.f32.mrf.mxu1  ;;  %v1447_v22 = vpop.f32.mrf.mxu2 }
 0x2cf   : > { %v1344_v16 = vadd.f32 %v1343_v15, %v1320_v14  ;;  %v1595_v14 = vld [vmem:[#allocation10 + $0x40] sm:$0xff]  ;;  %v1693_v15 = vld [vmem:[#allocation10 + $0xf8] sm:$0xff] }
 0x2d0   : > { %1622 = vmatpush.msrb.mxu1 %v1595_v14  ;;  %1705 = vmatpush.msra.mxu2 %v1693_v15  ;;  %v1773_v14 = vld [vmem:[%s2946_s28] sm:$0x1] }
 0x2d1   : > { %v1380_v18 = vadd.f32 %v1377_v17, %v1344_v16  ;;  %v1692_v16 = vld [vmem:[#allocation10 + $0xf0] sm:$0xff]  ;;  %v1659_v17 = vld [vmem:[#allocation10 + $0xb8] sm:$0xff] }
 0x2d2   : > { %1671 = vmatpush.msra.mxu1 %v1659_v17  ;;  %1706 = vmatpush.msra.mxu2 %v1692_v16 }
 0x2d8   : > { %v1412_v19 = vpop.f32.mrf.mxu1 }
 0x2d9   : > { %v1415_v20 = vadd.f32 %v1412_v19, %v1380_v18  ;;  %v1658_v18 = vld [vmem:[#allocation10 + $0xb0] sm:$0xff]  ;;  %v1691_v19 = vld [vmem:[#allocation10 + $0xe8] sm:$0xff] }
 0x2da   : > { %1672 = vmatpush.msra.mxu1 %v1658_v18  ;;  %1707 = vmatpush.msra.mxu2 %v1691_v19 }
 0x2db   : > { %v1450_v23 = vadd.f32 %v1447_v22, %v1415_v20  ;;  %v1690_v20 = vld [vmem:[#allocation10 + $0xe0] sm:$0xff] }
 0x2dc   : > { %v1656_v22 = vld [vmem:[#allocation10 + $0xa0] sm:$0xff]  ;;  %1708 = vmatpush.msra.mxu2 %v1690_v20 }
 0x2dd   : > { %v1455_v24 = vadd.f32 %v2155_v21, %v1450_v23  ;;  %v1657_v21 = vld [vmem:[#allocation10 + $0xa8] sm:$0xff]  ;;  %v1689_v23 = vld [vmem:[#allocation10 + $0xd8] sm:$0xff] }
 0x2de   : > { %1673 = vmatpush.msra.mxu1 %v1657_v21  ;;  %1709 = vmatpush.msra.mxu2 %v1689_v23 }
 0x2df   : > { %v1456_v25 = vmax.f32 %v1455_v24, 0.0  ;;  %v1688_v24 = vld [vmem:[#allocation10 + $0xd0] sm:$0xff] }
 0x2e0   : > { %1674 = vmatpush.msra.mxu1 %v1656_v22  ;;  %1710 = vmatpush.msra.mxu2 %v1688_v24 }
 0x2e1   : > { %1477 = vmatpush.msra.mxu0 %v1456_v25  ;;  %1502 = vmatpush.msra.mxu3 %v1456_v25  ;;  %v1655_v25 = vld [vmem:[#allocation10 + $0x98] sm:$0xff] }
 0x2e2   : > { %2037 = vmatmul.msk.f32.vlgmr.msra.gmra.mxu3 %vm1458_vm5, %v2036_v26  ;;  %2035 = vmatmul.msk.f32.vlgmr.msra.gmra.mxu0 %vm1458_vm5, %v1457_v27  ;;  %v1654_v26 = vld [vmem:[#allocation10 + $0x90] sm:$0xff]  ;;  %v1687_v27 = vld [vmem:[#allocation10 + $0xc8] sm:$0xff] }
 0x2e3   : > { %1561 = vmatpush.msrb.mxu3 %v1560_v28  ;;  %1524 = vmatpush.msrb.mxu0 %v1523_v29  ;;  %v1686_v28 = vld [vmem:[#allocation10 + $0xc0] sm:$0xff]  ;;  %v1653_v29 = vld [vmem:[#allocation10 + $0x88] sm:$0xff] }
 0x2e4   : > { %1675 = vmatpush.msra.mxu1 %v1655_v25  ;;  %1711 = vmatpush.msra.mxu2 %v1687_v27 }
 0x2e5   : > { %1562 = vmatpush.msrb.mxu3 %v1559_v30  ;;  %1525 = vmatpush.msrb.mxu0 %v1522_v31  ;;  %v1652_v30 = vld [vmem:[#allocation10 + $0x80] sm:$0xff]  ;;  %v1735_v31 = vld [vmem:[#allocation12 + $0x70] sm:$0xff] }
 0x2e6   : > { %1676 = vmatpush.msra.mxu1 %v1654_v26  ;;  %1712 = vmatpush.msra.mxu2 %v1686_v28 }
 0x2e7   : > { %1563 = vmatpush.msrb.mxu3 %v1558_v32  ;;  %1526 = vmatpush.msrb.mxu0 %v1521_v33  ;;  %v1734_v32 = vld [vmem:[#allocation12 + $0x68] sm:$0xff]  ;;  %v1733_v33 = vld [vmem:[#allocation12 + $0x60] sm:$0xff] }
 0x2e8   : > { %1677 = vmatpush.msra.mxu1 %v1653_v29 }
 0x2e9   : > { %1564 = vmatpush.msrb.mxu3 %v1557_v34  ;;  %1527 = vmatpush.msrb.mxu0 %v1520_v35  ;;  %v1732_v34 = vld [vmem:[#allocation12 + $0x58] sm:$0xff]  ;;  %v1731_v35 = vld [vmem:[#allocation12 + $0x50] sm:$0xff] }
 0x2ea   : > { %1678 = vmatpush.msra.mxu1 %v1652_v30 }
 0x2eb   : > { %1565 = vmatpush.msrb.mxu3 %v1556_v36  ;;  %1528 = vmatpush.msrb.mxu0 %v1519_v37  ;;  %v1730_v36 = vld [vmem:[#allocation12 + $0x48] sm:$0xff] }
 0x2ed   : > { %1566 = vmatpush.msrb.mxu3 %v1555_v38  ;;  %1529 = vmatpush.msrb.mxu0 %v1518_v39 }
 0x2ef   : > { %1567 = vmatpush.msrb.mxu3 %v1554_v40  ;;  %1530 = vmatpush.msrb.mxu0 %v1517_v41 }
 0x2f1   : > { %1568 = vmatpush.msrb.mxu3 %v1553_v42  ;;  %1531 = vmatpush.msrb.mxu0 %v1516_v43 }
 0x2f3   : > { %1569 = vmatpush.msrb.mxu3 %v1552_v44  ;;  %1532 = vmatpush.msrb.mxu0 %v1515_v45  ;;  %v1729_v44 = vld [vmem:[#allocation12 + $0x40] sm:$0xff]  ;;  %v1728_v45 = vld [vmem:[#allocation12 + $0x38] sm:$0xff] }
 0x2f5   : > { %1570 = vmatpush.msrb.mxu3 %v1551_v46  ;;  %1533 = vmatpush.msrb.mxu0 %v1514_v47  ;;  %v1727_v46 = vld [vmem:[#allocation12 + $0x30] sm:$0xff]  ;;  %v1726_v47 = vld [vmem:[#allocation12 + $0x28] sm:$0xff] }
 0x2f7   : > { %1571 = vmatpush.msrb.mxu3 %v1550_v48  ;;  %1534 = vmatpush.msrb.mxu0 %v1513_v49  ;;  %v1725_v48 = vld [vmem:[#allocation12 + $0x20] sm:$0xff]  ;;  %v1724_v49 = vld [vmem:[#allocation12 + $0x18] sm:$0xff] }
 0x2f9   : > { %1572 = vmatpush.msrb.mxu3 %v1549_v50  ;;  %1535 = vmatpush.msrb.mxu0 %v1512_v53  ;;  %v1723_v50 = vld [vmem:[#allocation12 + $0x10] sm:$0xff]  ;;  %v1772_v53 = vld [vmem:[#allocation13 + $0x50] sm:$0xf] }
 0x2fb   : > { %1573 = vmatpush.msrb.mxu3 %v1548_v51  ;;  %1536 = vmatpush.msrb.mxu0 %v1511_v54  ;;  %v1722_v51 = vld [vmem:[#allocation12 + $0x8] sm:$0xff]  ;;  %v1771_v54 = vld [vmem:[#allocation13 + $0x48] sm:$0xff] }
 0x2fd   : > { %1574 = vmatpush.msrb.mxu3 %v1547_v52  ;;  %1537 = vmatpush.msrb.mxu0 %v1510_v55  ;;  %v1721_v52 = vld [vmem:[#allocation12] sm:$0xff]  ;;  %v1770_v55 = vld [vmem:[#allocation13 + $0x40] sm:$0xff] }
 0x2ff   : > { %1575 = vmatpush.msrb.mxu3 %v1546_v56  ;;  %1538 = vmatpush.msrb.mxu0 %v1509_v57  ;;  %v1769_v56 = vld [vmem:[#allocation13 + $0x38] sm:$0xff]  ;;  %v1768_v57 = vld [vmem:[#allocation13 + $0x30] sm:$0xff] }
 0x301   : > { %1576 = vmatpush.msrb.mxu3 %v1545_v58  ;;  %1539 = vmatpush.msrb.mxu0 %v1508_v59  ;;  %v1767_v58 = vld [vmem:[#allocation13 + $0x28] sm:$0xff]  ;;  %v1766_v59 = vld [vmem:[#allocation13 + $0x20] sm:$0xff] }
 0x303   : > { %1742 = vmatpush.msra.mxu0 %v1735_v31  ;;  %2043 = vmatpush.msk.msra.mxu3 %vm1778_vm8, %v1772_v53 }
 0x305   : > { %1743 = vmatpush.msra.mxu0 %v1734_v32  ;;  %1788 = vmatpush.msra.mxu3 %v1771_v54 }
 0x307   : > { %1744 = vmatpush.msra.mxu0 %v1733_v33  ;;  %1789 = vmatpush.msra.mxu3 %v1770_v55 }
 0x309   : > { %1745 = vmatpush.msra.mxu0 %v1732_v34  ;;  %1790 = vmatpush.msra.mxu3 %v1769_v56 }
 0x30b   : > { %1746 = vmatpush.msra.mxu0 %v1731_v35  ;;  %1791 = vmatpush.msra.mxu3 %v1768_v57 }
 0x30d   : > { %1747 = vmatpush.msra.mxu0 %v1730_v36  ;;  %1792 = vmatpush.msra.mxu3 %v1767_v58 }
 0x30f   : > { %1748 = vmatpush.msra.mxu0 %v1729_v44  ;;  %1793 = vmatpush.msra.mxu3 %v1766_v59 }
 0x311   : > { %1749 = vmatpush.msra.mxu0 %v1728_v45  ;;  %1794 = vmatpush.msra.mxu3 %v1765_v61 }
 0x313   : > { %1750 = vmatpush.msra.mxu0 %v1727_v46 }
 0x315   : > { %1751 = vmatpush.msra.mxu0 %v1726_v47 }
 0x317   : > { %1752 = vmatpush.msra.mxu0 %v1725_v48 }
 0x319   : > { %1753 = vmatpush.msra.mxu0 %v1724_v49 }
 0x31b   : > { %1754 = vmatpush.msra.mxu0 %v1723_v50 }
 0x31d   : > { %1755 = vmatpush.msra.mxu0 %v1722_v51 }
 0x31f   : > { %1756 = vmatpush.msra.mxu0 %v1721_v52 }
 0x35f   : > { %v1479_v6 = vpop.f32.mrf.mxu0 }
 0x365   : > { %v1504_v7 = vpop.f32.mrf.mxu3 }
 0x366   : > { %v1507_v8 = vmax.f32 %v1479_v6, %v1504_v7  ;;  %v1764_v7 = vld [vmem:[#allocation13 + $0x10] sm:$0xff] }
 0x367   : > { %1795 = vmatpush.msra.mxu3 %v1764_v7 }
 0x368   : > { %1577 = vmatmul.f32.vlgmr.msrb.gmra.mxu3 %v1507_v8  ;;  %1540 = vmatmul.f32.vlgmr.msrb.gmra.mxu0 %v1507_v8  ;;  %v1763_v8 = vld [vmem:[#allocation13 + $0x8] sm:$0xff] }
 0x369   : > { %1796 = vmatpush.msra.mxu3 %v1763_v8 }
 0x36b   : > { %1797 = vmatpush.msra.mxu3 %v1762_v9 }
 0x3e5   : > { %v1541_v37 = vpop.f32.mrf.mxu0 }
 0x3eb   : > { %v1578_v38 = vpop.f32.mrf.mxu3 }
 0x3ec   : > { %v1581_v39 = vmax.f32 %v1541_v37, %v1578_v38 }
 0x3ee   : > { %1583 = vst.msk [vmem:[#allocation3] sm:$0xf] %vm1582_vm6, %v1581_v39 }
 0x3f5   : > { %v1584_v40 = vld [vmem:[#allocation3] sm:$0x1]  ;;  %v1593_v41 = vld [vmem:[#allocation3 + $0x1] sm:$0x1]  ;;  %v1684_v42 = vld [vmem:[#allocation3 + $0x3] sm:$0x1] }
 0x3f6   : > { %2039 = vmatmul.msk.f32.vlgmr.msrb.gmra.mxu2 %vm1603_vm7, %v1584_v40  ;;  %2038 = vmatmul.msk.f32.vlgmr.msrb.gmra.mxu1 %vm1603_vm7, %v1593_v41  ;;  %v1650_v43 = vld [vmem:[#allocation3 + $0x2] sm:$0x1] }
 0x3fe   : > { %2041 = vmatmul.msk.f32.vlgmr.msra.gmra.mxu2 %vm1603_vm7, %v1684_v42  ;;  %2040 = vmatmul.msk.f32.vlgmr.msra.gmra.mxu1 %vm1603_vm7, %v1650_v43 }
 0x473   : > { %v1624_v60 = vpop.f32.mrf.mxu1 }
 0x479   : > { %v1647_v62 = vpop.f32.mrf.mxu2 }
 0x47a   : > { %v1648_v63 = vadd.f32 %v1647_v62, %v1624_v60 }
 0x47b   : > { %v1680_v0 = vpop.f32.mrf.mxu1 }
 0x47c   : > { %v1683_v1 = vadd.f32 %v1680_v0, %v1648_v63 }
 0x481   : > { %v1714_v2 = vpop.f32.mrf.mxu2 }
 0x482   : > { %v1717_v4 = vadd.f32 %v1714_v2, %v1683_v1 }
 0x484   : > { %v1719_v5 = vadd.f32 %v1718_v3, %v1717_v4 }
 0x486   : > { %v1720_v6 = vmax.f32 %v1719_v5, 0.0 }
 0x488   : > { %2042 = vmatmul.msk.f32.vlgmr.msra.gmra.mxu0 %vm1737_vm9, %v1720_v6 }
 0x505   : > { %v1758_v11 = vpop.f32.mrf.mxu0 }
 0x506   : > { %v1759_v12 = vadd.f32 %v1758_v11, %v1736_v10 }
 0x508   : > { %v1761_v13 = vmax.f32 %v1759_v12, 0.0 }
 0x50a   : > { %2044 = vmatmul.msk.f32.vlgmr.msra.gmra.mxu3 %vm1774_vm10, %v1761_v13 }
 0x58d   : > { %v1799_v15 = vpop.f32.mrf.mxu3 }
 0x58e   : > { %v1800_v16 = vadd.f32 %v1799_v15, %v1773_v14 }
 0x590   : > { %1803 = vst.msk [vmem:[%s586_s1] sm:$0x1] %vm1802_vm11, %v1800_v16 }
 0x591   : > { %2363 = shalt.err (!%p2360_p8)
}
 0x592   : > { %2075 = dma.vmem_to_hbm [thread:$0]  (%p2544_p5), %s1816_s15, 16, %s1818_s27, %s1805_s30  }
 0x593 PF: > { %s2948_s25 = sld [smem:[#allocation23_spill]] }
 0x594   : > { %s2949_s21 = sld [smem:[#allocation21_spill]] }
 0x599   : > { %p2112_p9 = scmp.ge.s32.totalorder %s2948_s25, 2 }
 0x59a   : > { %s1829_s14 = sand.u32 1, %s2949_s21  }
 0x59b   : > { %p2097_p10 = pnand %p2112_p9, %p2548_p6  ;;  %s1830_s29 = scalar_lea.sflag [#allocation6], %s1829_s14 }
 0x59d   : > { %p2098_p11 = pneg %p2097_p10 }
 0x59f   : > { %2397 = dma.done.wait (%p2098_p11), %s1830_s29, 16  }
 0x5a0   : > { %2399 = vsyncadd (%p2098_p11), %s1830_s29, 4294967280  ;;  %s2951_s21 = sld [smem:[#allocation24_spill]]  ;;  %s2954_s18 = smov %s2406_s19 }
 0x5a1   : > { %s2952_s28 = sld [smem:[#allocation22_spill]] }
 0x5a2   : > { %s2953_s20 = sld [smem:[#allocation25_spill]] }
 0x5a6   : > { %p29_p12 = scmp.ge.s32.totalorder %s2951_s21, 4  }
 0x5a7   : > { %s2955_s19 = smov %s2952_s28 }
 0x5a8   :  { %31 = sbr.rel (!%p29_p12) target bundleno = 13 (0xd), region = 155 }
 0x5ad   :  { %1835 = vsyncpa [#allocation5], 1 }
 0x5ae   :  { %1837 = vsyncpa [#allocation5 + $0x1], 1 }
 0x5af   :  { %1838 = vsyncpa [#allocation8], 1 }
 0x5b0   :  { %1839 = vsyncpa [#allocation11], 1 }
 0x5b1   :  { %1840 = vsyncpa [#allocation14], 1 }
 0x5b2   :  { %1841 = vsyncpa [#allocation6], 1 }
 0x5b3   :  { %1843 = vsyncpa [#allocation6 + $0x1], 1 }

</bundles_post_ra>
